<compile_context>
chip_gen: v6e
topology: v6e:2x2x1
jax: 0.10.0
libtpu: 0.0.40
codegen_flags: <defaults>
</compile_context>

<pallas_src>
import functools

import jax
import jax.numpy as jnp
from jax import lax
from jax.experimental import pallas as pl
from jax.experimental.pallas import tpu as pltpu


def _encoder_kernel(x_ref, pos_ref, bias_ref,
                    wq_ref, wk_ref, wv_ref, wo_ref,
                    bq_ref, bk_ref, bv_ref, bo_ref,
                    w1_ref, b1_ref, w2_ref, b2_ref,
                    g1_ref, be1_ref, g2_ref, be2_ref,
                    out_ref, *, nhead, eps=1e-5):
    layer = pl.program_id(1)

    # Seed the VMEM-resident activation carry (out block index is constant over
    # the layer axis, so it stays in VMEM for all num_layers iterations).
    @pl.when(layer == 0)
    def _():
        out_ref[...] = x_ref[...]

    x = out_ref[0]          # [hw, d]  f32 activation carry
    pos = pos_ref[0]        # [hw, d]
    bias = bias_ref[0]      # [1, hw]  additive key-padding bias (0 or -1e9)

    d = x.shape[-1]
    hd = d // nhead

    # ---- self-attention --------------------------------------------------
    qk_in = (x + pos).astype(jnp.bfloat16)      # q = k = x + pos
    x_bf = x.astype(jnp.bfloat16)               # v = x

    # Fused projections (weights pre-transposed; scale folded into Wq / bq).
    q = jnp.dot(qk_in, wq_ref[...], preferred_element_type=jnp.float32) + bq_ref[...]
    k = jnp.dot(qk_in, wk_ref[...], preferred_element_type=jnp.float32) + bk_ref[...]
    v = jnp.dot(x_bf, wv_ref[...], preferred_element_type=jnp.float32) + bv_ref[...]
    q = q.astype(jnp.bfloat16)
    k = k.astype(jnp.bfloat16)
    v = v.astype(jnp.bfloat16)

    contract_last = (((1,), (1,)), ((), ()))    # A[i,c] * B[j,c] -> [i, j]
    heads = []
    for h in range(nhead):                      # static loop over heads
        sl = slice(h * hd, (h + 1) * hd)
        qh, kh, vh = q[:, sl], k[:, sl], v[:, sl]
        s = lax.dot_general(qh, kh, contract_last,
                            preferred_element_type=jnp.float32)      # [hw, hw]
        s = s + bias                                                  # additive mask
        m = jnp.max(s, axis=-1, keepdims=True)
        e = jnp.exp(s - m)
        p = e * pl.reciprocal(jnp.sum(e, axis=-1, keepdims=True), approx=True)
        heads.append(jnp.dot(p.astype(jnp.bfloat16), vh,
                             preferred_element_type=jnp.float32))     # [hw, hd]
    attn = jnp.concatenate(heads, axis=-1).astype(jnp.bfloat16)       # [hw, d]
    attn = jnp.dot(attn, wo_ref[...], preferred_element_type=jnp.float32) + bo_ref[...]

    # ---- residual + LayerNorm 1 (post-norm) -------------------------------
    x1 = x + attn
    mu1 = jnp.mean(x1, axis=-1, keepdims=True)
    xc1 = x1 - mu1
    var1 = jnp.mean(xc1 * xc1, axis=-1, keepdims=True)
    x1 = xc1 * lax.rsqrt(var1 + eps) * g1_ref[...] + be1_ref[...]

    # ---- FFN ---------------------------------------------------------------
    h1 = jnp.dot(x1.astype(jnp.bfloat16), w1_ref[...],
                 preferred_element_type=jnp.float32) + b1_ref[...]
    h1 = jnp.maximum(h1, 0.0)
    ff = jnp.dot(h1.astype(jnp.bfloat16), w2_ref[...],
                 preferred_element_type=jnp.float32) + b2_ref[...]

    # ---- residual + LayerNorm 2 --------------------------------------------
    x2 = x1 + ff
    mu2 = jnp.mean(x2, axis=-1, keepdims=True)
    xc2 = x2 - mu2
    var2 = jnp.mean(xc2 * xc2, axis=-1, keepdims=True)
    x2 = xc2 * lax.rsqrt(var2 + eps) * g2_ref[...] + be2_ref[...]

    out_ref[...] = x2[None].astype(out_ref.dtype)


def _prep_params(params, nhead):
    """Pre-transpose weights, fold the attention scale into Wq/bq, cast to bf16."""
    d = params["wq"].shape[0]
    hd = d // nhead
    scale = 1.0 / float(hd) ** 0.5
    bf16, f32 = jnp.bfloat16, jnp.float32
    return dict(
        wq_t=(params["wq"].T * scale).astype(bf16),   # [d, d]
        wk_t=params["wk"].T.astype(bf16),              # [d, d]
        wv_t=params["wv"].T.astype(bf16),              # [d, d]
        wo_t=params["wo"].T.astype(bf16),              # [d, d]
        bq_s=(params["bq"] * scale).astype(f32),       # [1, d]
        bk=params["bk"].astype(f32),
        bv=params["bv"].astype(f32),
        bo=params["bo"].astype(f32),
        w1_t=params["w1"].T.astype(bf16),              # [d, dff]
        b1=params["b1"].astype(f32),                   # [1, dff]
        w2_t=params["w2"].T.astype(bf16),              # [dff, d]
        b2=params["b2"].astype(f32),                   # [1, d]
        g1=params["g1"].astype(f32), be1=params["be1"].astype(f32),
        g2=params["g2"].astype(f32), be2=params["be2"].astype(f32),
    )


def transformer_encoder(x_sbd, key_padding_mask_bh, pos_sbd, params, *, num_layers, nhead):
    """Matches TransformerEncoder.forward (shared encoder_layer applied num_layers times).

    x_sbd, pos_sbd: [hw, bs, d] (PyTorch seq-first); key_padding_mask_bh: [bs, hw] (1 = pad).
    """
    x = jnp.transpose(x_sbd, (1, 0, 2)).astype(jnp.float32)        # [bs, hw, d]
    pos = jnp.transpose(pos_sbd, (1, 0, 2)).astype(jnp.float32)    # [bs, hw, d]
    # Key-padding mask as an additive bias, computed once on the host side.
    bias = (key_padding_mask_bh.astype(jnp.float32) * -1e9)[:, None, :]   # [bs, 1, hw]

    bs, hw, d = x.shape
    assert d % nhead == 0
    p = _prep_params(params, nhead)
    dff = p["w1_t"].shape[1]

    act_spec = lambda: pl.BlockSpec((1, hw, d), lambda b, l: (b, 0, 0))
    fixed = lambda shape: pl.BlockSpec(shape, lambda b, l: (0, 0))   # resident weights

    in_specs = [
        act_spec(),                                            # x (layer-0 input)
        act_spec(),                                            # pos
        pl.BlockSpec((1, 1, hw), lambda b, l: (b, 0, 0)),      # additive mask bias
        fixed((d, d)), fixed((d, d)), fixed((d, d)), fixed((d, d)),      # wq_t wk_t wv_t wo_t
        fixed((1, d)), fixed((1, d)), fixed((1, d)), fixed((1, d)),      # bq_s bk bv bo
        fixed((d, dff)), fixed((1, dff)), fixed((dff, d)), fixed((1, d)),  # w1_t b1 w2_t b2
        fixed((1, d)), fixed((1, d)), fixed((1, d)), fixed((1, d)),      # g1 be1 g2 be2
    ]

    kernel = functools.partial(_encoder_kernel, nhead=nhead)
    out = pl.pallas_call(
        kernel,
        out_shape=jax.ShapeDtypeStruct((bs, hw, d), jnp.float32),
        grid=(bs, num_layers),
        in_specs=in_specs,
        out_specs=pl.BlockSpec((1, hw, d), lambda b, l: (b, 0, 0)),
        input_output_aliases={0: 0},   # reuse x's HBM buffer for the output
        compiler_params=pltpu.CompilerParams(
            dimension_semantics=("parallel", "arbitrary"),
            vmem_limit_bytes=64 * 1024 * 1024,
        ),
    )(x, pos, bias,
      p["wq_t"], p["wk_t"], p["wv_t"], p["wo_t"],
      p["bq_s"], p["bk"], p["bv"], p["bo"],
      p["w1_t"], p["b1"], p["w2_t"], p["b2"],
      p["g1"], p["be1"], p["g2"], p["be2"])

    return jnp.transpose(out, (1, 0, 2))    # back to [hw, bs, d]


def init_params(key, d, dff):
    ks = jax.random.split(key, 6)
    s = 0.05
    return {
        "wq": jax.random.normal(ks[0], (d, d), jnp.float32) * s,
        "bq": jnp.zeros((1, d), jnp.float32),
        "wk": jax.random.normal(ks[1], (d, d), jnp.float32) * s,
        "bk": jnp.zeros((1, d), jnp.float32),
        "wv": jax.random.normal(ks[2], (d, d), jnp.float32) * s,
        "bv": jnp.zeros((1, d), jnp.float32),
        "wo": jax.random.normal(ks[3], (d, d), jnp.float32) * s,
        "bo": jnp.zeros((1, d), jnp.float32),
        "w1": jax.random.normal(ks[4], (dff, d), jnp.float32) * s,
        "b1": jnp.zeros((1, dff), jnp.float32),
        "w2": jax.random.normal(ks[5], (d, dff), jnp.float32) * s,
        "b2": jnp.zeros((1, d), jnp.float32),
        "g1": jnp.ones((1, d), jnp.float32),
        "be1": jnp.zeros((1, d), jnp.float32),
        "g2": jnp.ones((1, d), jnp.float32),
        "be2": jnp.zeros((1, d), jnp.float32),
    }


def _layer_norm(x, g, b, eps=1e-5):
    mu = jnp.mean(x, axis=-1, keepdims=True)
    var = jnp.mean((x - mu) ** 2, axis=-1, keepdims=True)
    return (x - mu) / jnp.sqrt(var + eps) * g + b


def transformer_encoder_reference(x_sbd, kpm_bh, pos_sbd, params, *, num_layers, nhead):
    """Pure-JAX f32 reference (same math as DETR / nn.MultiheadAttention, eval)."""
    x = jnp.transpose(x_sbd, (1, 0, 2)).astype(jnp.float32)
    pos = jnp.transpose(pos_sbd, (1, 0, 2)).astype(jnp.float32)
    bs, hw, d = x.shape
    hd = d // nhead
    scale = 1.0 / float(hd) ** 0.5
    bias = (kpm_bh.astype(jnp.float32) * -1e9)[:, None, None, :]    # [bs,1,1,hw]
    for _ in range(num_layers):
        qk = x + pos
        q = qk @ params["wq"].T + params["bq"]
        k = qk @ params["wk"].T + params["bk"]
        v = x @ params["wv"].T + params["bv"]
        qh = q.reshape(bs, hw, nhead, hd).transpose(0, 2, 1, 3) * scale
        kh = k.reshape(bs, hw, nhead, hd).transpose(0, 2, 1, 3)
        vh = v.reshape(bs, hw, nhead, hd).transpose(0, 2, 1, 3)
        s = jnp.einsum("bhqc,bhkc->bhqk", qh, kh) + bias
        pr = jax.nn.softmax(s, axis=-1)
        a = jnp.einsum("bhqk,bhkc->bhqc", pr, vh)
        a = a.transpose(0, 2, 1, 3).reshape(bs, hw, d)
        a = a @ params["wo"].T + params["bo"]
        x1 = _layer_norm(x + a, params["g1"], params["be1"])
        h1 = jax.nn.relu(x1 @ params["w1"].T + params["b1"])
        ff = h1 @ params["w2"].T + params["b2"]
        x = _layer_norm(x1 + ff, params["g2"], params["be2"])
    return jnp.transpose(x, (1, 0, 2))


if __name__ == "__main__":
    hw, bs, d = 16, 2, 32
    nhead, dff, num_layers = 4, 64, 2

    key = jax.random.PRNGKey(0)
    kx, kp, kw = jax.random.split(key, 3)
    x = jax.random.normal(kx, (hw, bs, d), jnp.float32)          # [hw, bs, d]
    pos = jax.random.normal(kp, (hw, bs, d), jnp.float32)        # [hw, bs, d]
    # key_padding_mask: 1 = padded; mask the last 3 tokens of batch 1.
    kpm = jnp.zeros((bs, hw), jnp.float32).at[1, -3:].set(1.0)   # [bs, hw]

    params = init_params(kw, d, dff)

    ref = transformer_encoder_reference(x, kpm, pos, params,
                                        num_layers=num_layers, nhead=nhead)
    out = transformer_encoder(x, kpm, pos, params,
                              num_layers=num_layers, nhead=nhead)
    out = jax.block_until_ready(out)

    assert out.shape == (hw, bs, d)
    assert bool(jnp.all(jnp.isfinite(out)))
    max_err = float(jnp.max(jnp.abs(out - ref)))
    # bf16 matmuls + approx reciprocal -> loose tolerance vs f32 reference.
    assert max_err < 0.2, f"max abs err vs reference = {max_err}"
    print("KERNEL_OK")
</pallas_src>

<mosaic_0001>
module attributes {stable_mosaic.version = 11 : i64} {
  func.func @_encoder_kernel(%arg0: i32, %arg1: i32, %arg2: memref<1x16x32xf32, #tpu.memory_space<vmem>>, %arg3: memref<1x16x32xf32, #tpu.memory_space<vmem>>, %arg4: memref<1x1x16xf32, #tpu.memory_space<vmem>>, %arg5: memref<32x32xbf16, #tpu.memory_space<vmem>>, %arg6: memref<32x32xbf16, #tpu.memory_space<vmem>>, %arg7: memref<32x32xbf16, #tpu.memory_space<vmem>>, %arg8: memref<32x32xbf16, #tpu.memory_space<vmem>>, %arg9: memref<1x32xf32, #tpu.memory_space<vmem>>, %arg10: memref<1x32xf32, #tpu.memory_space<vmem>>, %arg11: memref<1x32xf32, #tpu.memory_space<vmem>>, %arg12: memref<1x32xf32, #tpu.memory_space<vmem>>, %arg13: memref<32x64xbf16, #tpu.memory_space<vmem>>, %arg14: memref<1x64xf32, #tpu.memory_space<vmem>>, %arg15: memref<64x32xbf16, #tpu.memory_space<vmem>>, %arg16: memref<1x32xf32, #tpu.memory_space<vmem>>, %arg17: memref<1x32xf32, #tpu.memory_space<vmem>>, %arg18: memref<1x32xf32, #tpu.memory_space<vmem>>, %arg19: memref<1x32xf32, #tpu.memory_space<vmem>>, %arg20: memref<1x32xf32, #tpu.memory_space<vmem>>, %arg21: memref<1x16x32xf32, #tpu.memory_space<vmem>>) attributes {dimension_semantics = [#tpu.dimension_semantics<parallel>, #tpu.dimension_semantics<arbitrary>], iteration_bounds = array<i64: 2, 2>, scalar_prefetch = 0 : i64, scratch_operands = 0 : i64, tpu.core_type = #tpu.core_type<tc>, window_params = [{transform_indices = @transform_0, window_bounds = array<i64: 1, 16, 32>}, {transform_indices = @transform_1, window_bounds = array<i64: 1, 16, 32>}, {transform_indices = @transform_2, window_bounds = array<i64: 1, 1, 16>}, {pipeline_mode = #tpu.pipeline_mode<synchronous>, transform_indices = @transform_3, window_bounds = array<i64: 32, 32>}, {pipeline_mode = #tpu.pipeline_mode<synchronous>, transform_indices = @transform_4, window_bounds = array<i64: 32, 32>}, {pipeline_mode = #tpu.pipeline_mode<synchronous>, transform_indices = @transform_5, window_bounds = array<i64: 32, 32>}, {pipeline_mode = #tpu.pipeline_mode<synchronous>, transform_indices = @transform_6, window_bounds = array<i64: 32, 32>}, {pipeline_mode = #tpu.pipeline_mode<synchronous>, transform_indices = @transform_7, window_bounds = array<i64: 1, 32>}, {pipeline_mode = #tpu.pipeline_mode<synchronous>, transform_indices = @transform_8, window_bounds = array<i64: 1, 32>}, {pipeline_mode = #tpu.pipeline_mode<synchronous>, transform_indices = @transform_9, window_bounds = array<i64: 1, 32>}, {pipeline_mode = #tpu.pipeline_mode<synchronous>, transform_indices = @transform_10, window_bounds = array<i64: 1, 32>}, {pipeline_mode = #tpu.pipeline_mode<synchronous>, transform_indices = @transform_11, window_bounds = array<i64: 32, 64>}, {pipeline_mode = #tpu.pipeline_mode<synchronous>, transform_indices = @transform_12, window_bounds = array<i64: 1, 64>}, {pipeline_mode = #tpu.pipeline_mode<synchronous>, transform_indices = @transform_13, window_bounds = array<i64: 64, 32>}, {pipeline_mode = #tpu.pipeline_mode<synchronous>, transform_indices = @transform_14, window_bounds = array<i64: 1, 32>}, {pipeline_mode = #tpu.pipeline_mode<synchronous>, transform_indices = @transform_15, window_bounds = array<i64: 1, 32>}, {pipeline_mode = #tpu.pipeline_mode<synchronous>, transform_indices = @transform_16, window_bounds = array<i64: 1, 32>}, {pipeline_mode = #tpu.pipeline_mode<synchronous>, transform_indices = @transform_17, window_bounds = array<i64: 1, 32>}, {pipeline_mode = #tpu.pipeline_mode<synchronous>, transform_indices = @transform_18, window_bounds = array<i64: 1, 32>}, {transform_indices = @transform_19, window_bounds = array<i64: 1, 16, 32>}]} {
    %c0_i32 = arith.constant 0 : i32
    %0 = arith.cmpi eq, %arg1, %c0_i32 : i32
    %1 = arith.extui %0 : i1 to i32
    %c0_i32_0 = arith.constant 0 : i32
    %2 = arith.cmpi ne, %1, %c0_i32_0 : i32
    scf.if %2 {
      %c0_76 = arith.constant 0 : index
      %c0_77 = arith.constant 0 : index
      %c0_78 = arith.constant 0 : index
      %171 = vector.load %arg2[%c0_76, %c0_77, %c0_78] : memref<1x16x32xf32, #tpu.memory_space<vmem>>, vector<1x16x32xf32>
      %c0_79 = arith.constant 0 : index
      %c0_80 = arith.constant 0 : index
      %c0_81 = arith.constant 0 : index
      %172 = vector.load %arg21[%c0_79, %c0_80, %c0_81] : memref<1x16x32xf32, #tpu.memory_space<vmem>>, vector<1x16x32xf32>
      tpu.vector_store %arg21[%c0_79, %c0_80, %c0_81], %171 {strides = array<i32>} : memref<1x16x32xf32, #tpu.memory_space<vmem>>, vector<1x16x32xf32>,
    } else {
    }
    %c0 = arith.constant 0 : index
    %c0_1 = arith.constant 0 : index
    %c0_2 = arith.constant 0 : index
    %3 = vector.load %arg21[%c0, %c0_1, %c0_2] : memref<1x16x32xf32, #tpu.memory_space<vmem>>, vector<1x16x32xf32>
    %4 = vector.shape_cast %3 : vector<1x16x32xf32> to vector<16x32xf32>
    %c0_3 = arith.constant 0 : index
    %c0_4 = arith.constant 0 : index
    %c0_5 = arith.constant 0 : index
    %5 = vector.load %arg3[%c0_3, %c0_4, %c0_5] : memref<1x16x32xf32, #tpu.memory_space<vmem>>, vector<1x16x32xf32>
    %6 = vector.shape_cast %5 : vector<1x16x32xf32> to vector<16x32xf32>
    %c0_6 = arith.constant 0 : index
    %c0_7 = arith.constant 0 : index
    %c0_8 = arith.constant 0 : index
    %7 = vector.load %arg4[%c0_6, %c0_7, %c0_8] : memref<1x1x16xf32, #tpu.memory_space<vmem>>, vector<1x1x16xf32>
    %8 = vector.shape_cast %7 : vector<1x1x16xf32> to vector<1x16xf32>
    %9 = arith.addf %4, %6 : vector<16x32xf32>
    %10 = arith.truncf %9 : vector<16x32xf32> to vector<16x32xbf16>
    %11 = arith.truncf %4 : vector<16x32xf32> to vector<16x32xbf16>
    %c0_9 = arith.constant 0 : index
    %c0_10 = arith.constant 0 : index
    %12 = vector.load %arg5[%c0_9, %c0_10] : memref<32x32xbf16, #tpu.memory_space<vmem>>, vector<32x32xbf16>
    %cst = arith.constant dense<0.000000e+00> : vector<16x32xf32>
    %13 = tpu.matmul %10, %12, %cst {dimension_numbers = #tpu.dot_dimension_numbers<[1], [0], [0], [1], [0, 0, 1, 1], [], []>} : vector<16x32xbf16>, vector<32x32xbf16>, vector<16x32xf32> -> vector<16x32xf32>
    %c0_11 = arith.constant 0 : index
    %c0_12 = arith.constant 0 : index
    %14 = vector.load %arg9[%c0_11, %c0_12] : memref<1x32xf32, #tpu.memory_space<vmem>>, vector<1x32xf32>
    %15 = vector.broadcast %14 : vector<1x32xf32> to vector<16x32xf32>
    %16 = arith.addf %13, %15 : vector<16x32xf32>
    %c0_13 = arith.constant 0 : index
    %c0_14 = arith.constant 0 : index
    %17 = vector.load %arg6[%c0_13, %c0_14] : memref<32x32xbf16, #tpu.memory_space<vmem>>, vector<32x32xbf16>
    %cst_15 = arith.constant dense<0.000000e+00> : vector<16x32xf32>
    %18 = tpu.matmul %10, %17, %cst_15 {dimension_numbers = #tpu.dot_dimension_numbers<[1], [0], [0], [1], [0, 0, 1, 1], [], []>} : vector<16x32xbf16>, vector<32x32xbf16>, vector<16x32xf32> -> vector<16x32xf32>
    %c0_16 = arith.constant 0 : index
    %c0_17 = arith.constant 0 : index
    %19 = vector.load %arg10[%c0_16, %c0_17] : memref<1x32xf32, #tpu.memory_space<vmem>>, vector<1x32xf32>
    %20 = vector.broadcast %19 : vector<1x32xf32> to vector<16x32xf32>
    %21 = arith.addf %18, %20 : vector<16x32xf32>
    %c0_18 = arith.constant 0 : index
    %c0_19 = arith.constant 0 : index
    %22 = vector.load %arg7[%c0_18, %c0_19] : memref<32x32xbf16, #tpu.memory_space<vmem>>, vector<32x32xbf16>
    %cst_20 = arith.constant dense<0.000000e+00> : vector<16x32xf32>
    %23 = tpu.matmul %11, %22, %cst_20 {dimension_numbers = #tpu.dot_dimension_numbers<[1], [0], [0], [1], [0, 0, 1, 1], [], []>} : vector<16x32xbf16>, vector<32x32xbf16>, vector<16x32xf32> -> vector<16x32xf32>
    %c0_21 = arith.constant 0 : index
    %c0_22 = arith.constant 0 : index
    %24 = vector.load %arg11[%c0_21, %c0_22] : memref<1x32xf32, #tpu.memory_space<vmem>>, vector<1x32xf32>
    %25 = vector.broadcast %24 : vector<1x32xf32> to vector<16x32xf32>
    %26 = arith.addf %23, %25 : vector<16x32xf32>
    %27 = arith.truncf %16 : vector<16x32xf32> to vector<16x32xbf16>
    %28 = arith.truncf %21 : vector<16x32xf32> to vector<16x32xbf16>
    %29 = arith.truncf %26 : vector<16x32xf32> to vector<16x32xbf16>
    %30 = vector.extract_strided_slice %27 {offsets = [0, 0], sizes = [16, 8], strides = [1, 1]} : vector<16x32xbf16> to vector<16x8xbf16>
    %31 = vector.extract_strided_slice %28 {offsets = [0, 0], sizes = [16, 8], strides = [1, 1]} : vector<16x32xbf16> to vector<16x8xbf16>
    %32 = vector.extract_strided_slice %29 {offsets = [0, 0], sizes = [16, 8], strides = [1, 1]} : vector<16x32xbf16> to vector<16x8xbf16>
    %cst_23 = arith.constant dense<0.000000e+00> : vector<16x16xf32>
    %33 = tpu.matmul %30, %31, %cst_23 {dimension_numbers = #tpu.dot_dimension_numbers<[1], [1], [0], [0], [0, 0, 1, 0], [], []>} : vector<16x8xbf16>, vector<16x8xbf16>, vector<16x16xf32> -> vector<16x16xf32>
    %34 = vector.broadcast %8 : vector<1x16xf32> to vector<16x16xf32>
    %35 = arith.addf %33, %34 : vector<16x16xf32>
    %cst_24 = arith.constant dense<0xFF800000> : vector<16xf32>
    %36 = vector.multi_reduction <maximumf>, %35, %cst_24 [1] : vector<16x16xf32> to vector<16xf32>
    %37 = vector.shape_cast %36 : vector<16xf32> to vector<16x1xf32>
    %38 = vector.broadcast %37 : vector<16x1xf32> to vector<16x16xf32>
    %39 = arith.subf %35, %38 : vector<16x16xf32>
    %40 = math.exp %39 : vector<16x16xf32>
    %cst_25 = arith.constant dense<0.000000e+00> : vector<16xf32>
    %41 = vector.multi_reduction <add>, %40, %cst_25 [1] : vector<16x16xf32> to vector<16xf32>
    %42 = vector.shape_cast %41 : vector<16xf32> to vector<16x1xf32>
    %43 = tpu.reciprocal %42 {approx = true} : vector<16x1xf32> -> vector<16x1xf32>
    %44 = vector.broadcast %43 : vector<16x1xf32> to vector<16x16xf32>
    %45 = arith.mulf %40, %44 : vector<16x16xf32>
    %46 = arith.truncf %45 : vector<16x16xf32> to vector<16x16xbf16>
    %cst_26 = arith.constant dense<0.000000e+00> : vector<16x8xf32>
    %47 = tpu.matmul %46, %32, %cst_26 {dimension_numbers = #tpu.dot_dimension_numbers<[1], [0], [0], [1], [0, 0, 1, 1], [], []>} : vector<16x16xbf16>, vector<16x8xbf16>, vector<16x8xf32> -> vector<16x8xf32>
    %48 = vector.extract_strided_slice %27 {offsets = [0, 8], sizes = [16, 8], strides = [1, 1]} : vector<16x32xbf16> to vector<16x8xbf16>
    %49 = vector.extract_strided_slice %28 {offsets = [0, 8], sizes = [16, 8], strides = [1, 1]} : vector<16x32xbf16> to vector<16x8xbf16>
    %50 = vector.extract_strided_slice %29 {offsets = [0, 8], sizes = [16, 8], strides = [1, 1]} : vector<16x32xbf16> to vector<16x8xbf16>
    %cst_27 = arith.constant dense<0.000000e+00> : vector<16x16xf32>
    %51 = tpu.matmul %48, %49, %cst_27 {dimension_numbers = #tpu.dot_dimension_numbers<[1], [1], [0], [0], [0, 0, 1, 0], [], []>} : vector<16x8xbf16>, vector<16x8xbf16>, vector<16x16xf32> -> vector<16x16xf32>
    %52 = vector.broadcast %8 : vector<1x16xf32> to vector<16x16xf32>
    %53 = arith.addf %51, %52 : vector<16x16xf32>
    %cst_28 = arith.constant dense<0xFF800000> : vector<16xf32>
    %54 = vector.multi_reduction <maximumf>, %53, %cst_28 [1] : vector<16x16xf32> to vector<16xf32>
    %55 = vector.shape_cast %54 : vector<16xf32> to vector<16x1xf32>
    %56 = vector.broadcast %55 : vector<16x1xf32> to vector<16x16xf32>
    %57 = arith.subf %53, %56 : vector<16x16xf32>
    %58 = math.exp %57 : vector<16x16xf32>
    %cst_29 = arith.constant dense<0.000000e+00> : vector<16xf32>
    %59 = vector.multi_reduction <add>, %58, %cst_29 [1] : vector<16x16xf32> to vector<16xf32>
    %60 = vector.shape_cast %59 : vector<16xf32> to vector<16x1xf32>
    %61 = tpu.reciprocal %60 {approx = true} : vector<16x1xf32> -> vector<16x1xf32>
    %62 = vector.broadcast %61 : vector<16x1xf32> to vector<16x16xf32>
    %63 = arith.mulf %58, %62 : vector<16x16xf32>
    %64 = arith.truncf %63 : vector<16x16xf32> to vector<16x16xbf16>
    %cst_30 = arith.constant dense<0.000000e+00> : vector<16x8xf32>
    %65 = tpu.matmul %64, %50, %cst_30 {dimension_numbers = #tpu.dot_dimension_numbers<[1], [0], [0], [1], [0, 0, 1, 1], [], []>} : vector<16x16xbf16>, vector<16x8xbf16>, vector<16x8xf32> -> vector<16x8xf32>
    %66 = vector.extract_strided_slice %27 {offsets = [0, 16], sizes = [16, 8], strides = [1, 1]} : vector<16x32xbf16> to vector<16x8xbf16>
    %67 = vector.extract_strided_slice %28 {offsets = [0, 16], sizes = [16, 8], strides = [1, 1]} : vector<16x32xbf16> to vector<16x8xbf16>
    %68 = vector.extract_strided_slice %29 {offsets = [0, 16], sizes = [16, 8], strides = [1, 1]} : vector<16x32xbf16> to vector<16x8xbf16>
    %cst_31 = arith.constant dense<0.000000e+00> : vector<16x16xf32>
    %69 = tpu.matmul %66, %67, %cst_31 {dimension_numbers = #tpu.dot_dimension_numbers<[1], [1], [0], [0], [0, 0, 1, 0], [], []>} : vector<16x8xbf16>, vector<16x8xbf16>, vector<16x16xf32> -> vector<16x16xf32>
    %70 = vector.broadcast %8 : vector<1x16xf32> to vector<16x16xf32>
    %71 = arith.addf %69, %70 : vector<16x16xf32>
    %cst_32 = arith.constant dense<0xFF800000> : vector<16xf32>
    %72 = vector.multi_reduction <maximumf>, %71, %cst_32 [1] : vector<16x16xf32> to vector<16xf32>
    %73 = vector.shape_cast %72 : vector<16xf32> to vector<16x1xf32>
    %74 = vector.broadcast %73 : vector<16x1xf32> to vector<16x16xf32>
    %75 = arith.subf %71, %74 : vector<16x16xf32>
    %76 = math.exp %75 : vector<16x16xf32>
    %cst_33 = arith.constant dense<0.000000e+00> : vector<16xf32>
    %77 = vector.multi_reduction <add>, %76, %cst_33 [1] : vector<16x16xf32> to vector<16xf32>
    %78 = vector.shape_cast %77 : vector<16xf32> to vector<16x1xf32>
    %79 = tpu.reciprocal %78 {approx = true} : vector<16x1xf32> -> vector<16x1xf32>
    %80 = vector.broadcast %79 : vector<16x1xf32> to vector<16x16xf32>
    %81 = arith.mulf %76, %80 : vector<16x16xf32>
    %82 = arith.truncf %81 : vector<16x16xf32> to vector<16x16xbf16>
    %cst_34 = arith.constant dense<0.000000e+00> : vector<16x8xf32>
    %83 = tpu.matmul %82, %68, %cst_34 {dimension_numbers = #tpu.dot_dimension_numbers<[1], [0], [0], [1], [0, 0, 1, 1], [], []>} : vector<16x16xbf16>, vector<16x8xbf16>, vector<16x8xf32> -> vector<16x8xf32>
    %84 = vector.extract_strided_slice %27 {offsets = [0, 24], sizes = [16, 8], strides = [1, 1]} : vector<16x32xbf16> to vector<16x8xbf16>
    %85 = vector.extract_strided_slice %28 {offsets = [0, 24], sizes = [16, 8], strides = [1, 1]} : vector<16x32xbf16> to vector<16x8xbf16>
    %86 = vector.extract_strided_slice %29 {offsets = [0, 24], sizes = [16, 8], strides = [1, 1]} : vector<16x32xbf16> to vector<16x8xbf16>
    %cst_35 = arith.constant dense<0.000000e+00> : vector<16x16xf32>
    %87 = tpu.matmul %84, %85, %cst_35 {dimension_numbers = #tpu.dot_dimension_numbers<[1], [1], [0], [0], [0, 0, 1, 0], [], []>} : vector<16x8xbf16>, vector<16x8xbf16>, vector<16x16xf32> -> vector<16x16xf32>
    %88 = vector.broadcast %8 : vector<1x16xf32> to vector<16x16xf32>
    %89 = arith.addf %87, %88 : vector<16x16xf32>
    %cst_36 = arith.constant dense<0xFF800000> : vector<16xf32>
    %90 = vector.multi_reduction <maximumf>, %89, %cst_36 [1] : vector<16x16xf32> to vector<16xf32>
    %91 = vector.shape_cast %90 : vector<16xf32> to vector<16x1xf32>
    %92 = vector.broadcast %91 : vector<16x1xf32> to vector<16x16xf32>
    %93 = arith.subf %89, %92 : vector<16x16xf32>
    %94 = math.exp %93 : vector<16x16xf32>
    %cst_37 = arith.constant dense<0.000000e+00> : vector<16xf32>
    %95 = vector.multi_reduction <add>, %94, %cst_37 [1] : vector<16x16xf32> to vector<16xf32>
    %96 = vector.shape_cast %95 : vector<16xf32> to vector<16x1xf32>
    %97 = tpu.reciprocal %96 {approx = true} : vector<16x1xf32> -> vector<16x1xf32>
    %98 = vector.broadcast %97 : vector<16x1xf32> to vector<16x16xf32>
    %99 = arith.mulf %94, %98 : vector<16x16xf32>
    %100 = arith.truncf %99 : vector<16x16xf32> to vector<16x16xbf16>
    %cst_38 = arith.constant dense<0.000000e+00> : vector<16x8xf32>
    %101 = tpu.matmul %100, %86, %cst_38 {dimension_numbers = #tpu.dot_dimension_numbers<[1], [0], [0], [1], [0, 0, 1, 1], [], []>} : vector<16x16xbf16>, vector<16x8xbf16>, vector<16x8xf32> -> vector<16x8xf32>
    %102 = tpu.concatenate %47, %65, %83, %101 in 1 : vector<16x8xf32>, vector<16x8xf32>, vector<16x8xf32>, vector<16x8xf32> -> vector<16x32xf32>
    %103 = arith.truncf %102 : vector<16x32xf32> to vector<16x32xbf16>
    %c0_39 = arith.constant 0 : index
    %c0_40 = arith.constant 0 : index
    %104 = vector.load %arg8[%c0_39, %c0_40] : memref<32x32xbf16, #tpu.memory_space<vmem>>, vector<32x32xbf16>
    %cst_41 = arith.constant dense<0.000000e+00> : vector<16x32xf32>
    %105 = tpu.matmul %103, %104, %cst_41 {dimension_numbers = #tpu.dot_dimension_numbers<[1], [0], [0], [1], [0, 0, 1, 1], [], []>} : vector<16x32xbf16>, vector<32x32xbf16>, vector<16x32xf32> -> vector<16x32xf32>
    %c0_42 = arith.constant 0 : index
    %c0_43 = arith.constant 0 : index
    %106 = vector.load %arg12[%c0_42, %c0_43] : memref<1x32xf32, #tpu.memory_space<vmem>>, vector<1x32xf32>
    %107 = vector.broadcast %106 : vector<1x32xf32> to vector<16x32xf32>
    %108 = arith.addf %105, %107 : vector<16x32xf32>
    %109 = arith.addf %4, %108 : vector<16x32xf32>
    %cst_44 = arith.constant dense<0.000000e+00> : vector<16xf32>
    %110 = vector.multi_reduction <add>, %109, %cst_44 [1] : vector<16x32xf32> to vector<16xf32>
    %111 = vector.shape_cast %110 : vector<16xf32> to vector<16x1xf32>
    %cst_45 = arith.constant 3.200000e+01 : f32
    %112 = vector.broadcast %cst_45 : f32 to vector<16x1xf32>
    %113 = arith.divf %111, %112 : vector<16x1xf32>
    %114 = vector.broadcast %113 : vector<16x1xf32> to vector<16x32xf32>
    %115 = arith.subf %109, %114 : vector<16x32xf32>
    %116 = arith.mulf %115, %115 : vector<16x32xf32>
    %cst_46 = arith.constant dense<0.000000e+00> : vector<16xf32>
    %117 = vector.multi_reduction <add>, %116, %cst_46 [1] : vector<16x32xf32> to vector<16xf32>
    %118 = vector.shape_cast %117 : vector<16xf32> to vector<16x1xf32>
    %cst_47 = arith.constant 3.200000e+01 : f32
    %119 = vector.broadcast %cst_47 : f32 to vector<16x1xf32>
    %120 = arith.divf %118, %119 : vector<16x1xf32>
    %cst_48 = arith.constant 9.99999974E-6 : f32
    %121 = vector.broadcast %cst_48 : f32 to vector<16x1xf32>
    %122 = arith.addf %120, %121 : vector<16x1xf32>
    %123 = math.rsqrt %122 : vector<16x1xf32>
    %124 = vector.broadcast %123 : vector<16x1xf32> to vector<16x32xf32>
    %125 = arith.mulf %115, %124 : vector<16x32xf32>
    %c0_49 = arith.constant 0 : index
    %c0_50 = arith.constant 0 : index
    %126 = vector.load %arg17[%c0_49, %c0_50] : memref<1x32xf32, #tpu.memory_space<vmem>>, vector<1x32xf32>
    %127 = vector.broadcast %126 : vector<1x32xf32> to vector<16x32xf32>
    %128 = arith.mulf %125, %127 : vector<16x32xf32>
    %c0_51 = arith.constant 0 : index
    %c0_52 = arith.constant 0 : index
    %129 = vector.load %arg18[%c0_51, %c0_52] : memref<1x32xf32, #tpu.memory_space<vmem>>, vector<1x32xf32>
    %130 = vector.broadcast %129 : vector<1x32xf32> to vector<16x32xf32>
    %131 = arith.addf %128, %130 : vector<16x32xf32>
    %132 = arith.truncf %131 : vector<16x32xf32> to vector<16x32xbf16>
    %c0_53 = arith.constant 0 : index
    %c0_54 = arith.constant 0 : index
    %133 = vector.load %arg13[%c0_53, %c0_54] : memref<32x64xbf16, #tpu.memory_space<vmem>>, vector<32x64xbf16>
    %cst_55 = arith.constant dense<0.000000e+00> : vector<16x64xf32>
    %134 = tpu.matmul %132, %133, %cst_55 {dimension_numbers = #tpu.dot_dimension_numbers<[1], [0], [0], [1], [0, 0, 1, 1], [], []>} : vector<16x32xbf16>, vector<32x64xbf16>, vector<16x64xf32> -> vector<16x64xf32>
    %c0_56 = arith.constant 0 : index
    %c0_57 = arith.constant 0 : index
    %135 = vector.load %arg14[%c0_56, %c0_57] : memref<1x64xf32, #tpu.memory_space<vmem>>, vector<1x64xf32>
    %136 = vector.broadcast %135 : vector<1x64xf32> to vector<16x64xf32>
    %137 = arith.addf %134, %136 : vector<16x64xf32>
    %cst_58 = arith.constant 0.000000e+00 : f32
    %138 = vector.broadcast %cst_58 : f32 to vector<16x64xf32>
    %139 = arith.maximumf %137, %138 : vector<16x64xf32>
    %140 = arith.truncf %139 : vector<16x64xf32> to vector<16x64xbf16>
    %c0_59 = arith.constant 0 : index
    %c0_60 = arith.constant 0 : index
    %141 = vector.load %arg15[%c0_59, %c0_60] : memref<64x32xbf16, #tpu.memory_space<vmem>>, vector<64x32xbf16>
    %cst_61 = arith.constant dense<0.000000e+00> : vector<16x32xf32>
    %142 = tpu.matmul %140, %141, %cst_61 {dimension_numbers = #tpu.dot_dimension_numbers<[1], [0], [0], [1], [0, 0, 1, 1], [], []>} : vector<16x64xbf16>, vector<64x32xbf16>, vector<16x32xf32> -> vector<16x32xf32>
    %c0_62 = arith.constant 0 : index
    %c0_63 = arith.constant 0 : index
    %143 = vector.load %arg16[%c0_62, %c0_63] : memref<1x32xf32, #tpu.memory_space<vmem>>, vector<1x32xf32>
    %144 = vector.broadcast %143 : vector<1x32xf32> to vector<16x32xf32>
    %145 = arith.addf %142, %144 : vector<16x32xf32>
    %146 = arith.addf %131, %145 : vector<16x32xf32>
    %cst_64 = arith.constant dense<0.000000e+00> : vector<16xf32>
    %147 = vector.multi_reduction <add>, %146, %cst_64 [1] : vector<16x32xf32> to vector<16xf32>
    %148 = vector.shape_cast %147 : vector<16xf32> to vector<16x1xf32>
    %cst_65 = arith.constant 3.200000e+01 : f32
    %149 = vector.broadcast %cst_65 : f32 to vector<16x1xf32>
    %150 = arith.divf %148, %149 : vector<16x1xf32>
    %151 = vector.broadcast %150 : vector<16x1xf32> to vector<16x32xf32>
    %152 = arith.subf %146, %151 : vector<16x32xf32>
    %153 = arith.mulf %152, %152 : vector<16x32xf32>
    %cst_66 = arith.constant dense<0.000000e+00> : vector<16xf32>
    %154 = vector.multi_reduction <add>, %153, %cst_66 [1] : vector<16x32xf32> to vector<16xf32>
    %155 = vector.shape_cast %154 : vector<16xf32> to vector<16x1xf32>
    %cst_67 = arith.constant 3.200000e+01 : f32
    %156 = vector.broadcast %cst_67 : f32 to vector<16x1xf32>
    %157 = arith.divf %155, %156 : vector<16x1xf32>
    %cst_68 = arith.constant 9.99999974E-6 : f32
    %158 = vector.broadcast %cst_68 : f32 to vector<16x1xf32>
    %159 = arith.addf %157, %158 : vector<16x1xf32>
    %160 = math.rsqrt %159 : vector<16x1xf32>
    %161 = vector.broadcast %160 : vector<16x1xf32> to vector<16x32xf32>
    %162 = arith.mulf %152, %161 : vector<16x32xf32>
    %c0_69 = arith.constant 0 : index
    %c0_70 = arith.constant 0 : index
    %163 = vector.load %arg19[%c0_69, %c0_70] : memref<1x32xf32, #tpu.memory_space<vmem>>, vector<1x32xf32>
    %164 = vector.broadcast %163 : vector<1x32xf32> to vector<16x32xf32>
    %165 = arith.mulf %162, %164 : vector<16x32xf32>
    %c0_71 = arith.constant 0 : index
    %c0_72 = arith.constant 0 : index
    %166 = vector.load %arg20[%c0_71, %c0_72] : memref<1x32xf32, #tpu.memory_space<vmem>>, vector<1x32xf32>
    %167 = vector.broadcast %166 : vector<1x32xf32> to vector<16x32xf32>
    %168 = arith.addf %165, %167 : vector<16x32xf32>
    %169 = vector.shape_cast %168 : vector<16x32xf32> to vector<1x16x32xf32>
    %c0_73 = arith.constant 0 : index
    %c0_74 = arith.constant 0 : index
    %c0_75 = arith.constant 0 : index
    %170 = vector.load %arg21[%c0_73, %c0_74, %c0_75] : memref<1x16x32xf32, #tpu.memory_space<vmem>>, vector<1x16x32xf32>
    tpu.vector_store %arg21[%c0_73, %c0_74, %c0_75], %169 {strides = array<i32>} : memref<1x16x32xf32, #tpu.memory_space<vmem>>, vector<1x16x32xf32>,
    return
  }
  func.func @transform_0(%arg0: i32, %arg1: i32) -> (i32, i32, i32) {
    %c0_i32 = arith.constant 0 : i32
    %c0_i32_0 = arith.constant 0 : i32
    %c0_i32_1 = arith.constant 0 : i32
    return %arg0, %c0_i32, %c0_i32_0 : i32, i32, i32
  }
  func.func @transform_1(%arg0: i32, %arg1: i32) -> (i32, i32, i32) {
    %c0_i32 = arith.constant 0 : i32
    %c0_i32_0 = arith.constant 0 : i32
    %c0_i32_1 = arith.constant 0 : i32
    return %arg0, %c0_i32, %c0_i32_0 : i32, i32, i32
  }
  func.func @transform_2(%arg0: i32, %arg1: i32) -> (i32, i32, i32) {
    %c0_i32 = arith.constant 0 : i32
    %c0_i32_0 = arith.constant 0 : i32
    %c0_i32_1 = arith.constant 0 : i32
    return %arg0, %c0_i32, %c0_i32_0 : i32, i32, i32
  }
  func.func @transform_3(%arg0: i32, %arg1: i32) -> (i32, i32) {
    %c0_i32 = arith.constant 0 : i32
    %c0_i32_0 = arith.constant 0 : i32
    %c0_i32_1 = arith.constant 0 : i32
    return %c0_i32, %c0_i32_0 : i32, i32
  }
  func.func @transform_4(%arg0: i32, %arg1: i32) -> (i32, i32) {
    %c0_i32 = arith.constant 0 : i32
    %c0_i32_0 = arith.constant 0 : i32
    %c0_i32_1 = arith.constant 0 : i32
    return %c0_i32, %c0_i32_0 : i32, i32
  }
  func.func @transform_5(%arg0: i32, %arg1: i32) -> (i32, i32) {
    %c0_i32 = arith.constant 0 : i32
    %c0_i32_0 = arith.constant 0 : i32
    %c0_i32_1 = arith.constant 0 : i32
    return %c0_i32, %c0_i32_0 : i32, i32
  }
  func.func @transform_6(%arg0: i32, %arg1: i32) -> (i32, i32) {
    %c0_i32 = arith.constant 0 : i32
    %c0_i32_0 = arith.constant 0 : i32
    %c0_i32_1 = arith.constant 0 : i32
    return %c0_i32, %c0_i32_0 : i32, i32
  }
  func.func @transform_7(%arg0: i32, %arg1: i32) -> (i32, i32) {
    %c0_i32 = arith.constant 0 : i32
    %c0_i32_0 = arith.constant 0 : i32
    %c0_i32_1 = arith.constant 0 : i32
    return %c0_i32, %c0_i32_0 : i32, i32
  }
  func.func @transform_8(%arg0: i32, %arg1: i32) -> (i32, i32) {
    %c0_i32 = arith.constant 0 : i32
    %c0_i32_0 = arith.constant 0 : i32
    %c0_i32_1 = arith.constant 0 : i32
    return %c0_i32, %c0_i32_0 : i32, i32
  }
  func.func @transform_9(%arg0: i32, %arg1: i32) -> (i32, i32) {
    %c0_i32 = arith.constant 0 : i32
    %c0_i32_0 = arith.constant 0 : i32
    %c0_i32_1 = arith.constant 0 : i32
    return %c0_i32, %c0_i32_0 : i32, i32
  }
  func.func @transform_10(%arg0: i32, %arg1: i32) -> (i32, i32) {
    %c0_i32 = arith.constant 0 : i32
    %c0_i32_0 = arith.constant 0 : i32
    %c0_i32_1 = arith.constant 0 : i32
    return %c0_i32, %c0_i32_0 : i32, i32
  }
  func.func @transform_11(%arg0: i32, %arg1: i32) -> (i32, i32) {
    %c0_i32 = arith.constant 0 : i32
    %c0_i32_0 = arith.constant 0 : i32
    %c0_i32_1 = arith.constant 0 : i32
    return %c0_i32, %c0_i32_0 : i32, i32
  }
  func.func @transform_12(%arg0: i32, %arg1: i32) -> (i32, i32) {
    %c0_i32 = arith.constant 0 : i32
    %c0_i32_0 = arith.constant 0 : i32
    %c0_i32_1 = arith.constant 0 : i32
    return %c0_i32, %c0_i32_0 : i32, i32
  }
  func.func @transform_13(%arg0: i32, %arg1: i32) -> (i32, i32) {
    %c0_i32 = arith.constant 0 : i32
    %c0_i32_0 = arith.constant 0 : i32
    %c0_i32_1 = arith.constant 0 : i32
    return %c0_i32, %c0_i32_0 : i32, i32
  }
  func.func @transform_14(%arg0: i32, %arg1: i32) -> (i32, i32) {
    %c0_i32 = arith.constant 0 : i32
    %c0_i32_0 = arith.constant 0 : i32
    %c0_i32_1 = arith.constant 0 : i32
    return %c0_i32, %c0_i32_0 : i32, i32
  }
  func.func @transform_15(%arg0: i32, %arg1: i32) -> (i32, i32) {
    %c0_i32 = arith.constant 0 : i32
    %c0_i32_0 = arith.constant 0 : i32
    %c0_i32_1 = arith.constant 0 : i32
    return %c0_i32, %c0_i32_0 : i32, i32
  }
  func.func @transform_16(%arg0: i32, %arg1: i32) -> (i32, i32) {
    %c0_i32 = arith.constant 0 : i32
    %c0_i32_0 = arith.constant 0 : i32
    %c0_i32_1 = arith.constant 0 : i32
    return %c0_i32, %c0_i32_0 : i32, i32
  }
  func.func @transform_17(%arg0: i32, %arg1: i32) -> (i32, i32) {
    %c0_i32 = arith.constant 0 : i32
    %c0_i32_0 = arith.constant 0 : i32
    %c0_i32_1 = arith.constant 0 : i32
    return %c0_i32, %c0_i32_0 : i32, i32
  }
  func.func @transform_18(%arg0: i32, %arg1: i32) -> (i32, i32) {
    %c0_i32 = arith.constant 0 : i32
    %c0_i32_0 = arith.constant 0 : i32
    %c0_i32_1 = arith.constant 0 : i32
    return %c0_i32, %c0_i32_0 : i32, i32
  }
  func.func @transform_19(%arg0: i32, %arg1: i32) -> (i32, i32, i32) {
    %c0_i32 = arith.constant 0 : i32
    %c0_i32_0 = arith.constant 0 : i32
    %c0_i32_1 = arith.constant 0 : i32
    return %arg0, %c0_i32, %c0_i32_0 : i32, i32, i32
  }
}

</mosaic_0001>

<bundles_post_ra>
// kernel: tpu_custom_call.1
= control target key start
LH: loop header
LB: loop body
LE: loop exit
PB: predicated region body
PF: predicated region fallthrough
CT: control target
= control target key end

     0   :  { %s3148_s0 = inlined_call_operand.hbm [shape: f32[2,16,32], index: 0, kind: input, shape index: {}, may-alias: {0,19}]   ;;  %s3149_s1 = inlined_call_operand.vmem [shape: f32[2,16,32], index: 1, kind: input, shape index: {}]   ;;  %s3150_s2 = inlined_call_operand.hbm [shape: f32[2,1,16], index: 2, kind: input, shape index: {}]   ;;  %s3151_s3 = inlined_call_operand.vmem [shape: bf16[32,32], index: 3, kind: input, shape index: {}]   ;;  %s3152_s4 = inlined_call_operand.vmem [shape: bf16[32,32], index: 4, kind: input, shape index: {}]   ;;  %s3153_s5 = inlined_call_operand.vmem [shape: bf16[32,32], index: 5, kind: input, shape index: {}]   ;;  %s3154_s6 = inlined_call_operand.vmem [shape: bf16[32,32], index: 6, kind: input, shape index: {}]   ;;  %s3155_s7 = inlined_call_operand.hbm [shape: f32[1,32], index: 7, kind: input, shape index: {}]   ;;  %s3156_s8 = inlined_call_operand.hbm [shape: f32[1,32], index: 8, kind: input, shape index: {}]   ;;  %s3157_s9 = inlined_call_operand.hbm [shape: f32[1,32], index: 9, kind: input, shape index: {}]   ;;  %s3158_s10 = inlined_call_operand.vmem [shape: f32[1,32], index: 10, kind: input, shape index: {}]   ;;  %s3159_s11 = inlined_call_operand.vmem [shape: bf16[32,64], index: 11, kind: input, shape index: {}]   ;;  %s3160_s12 = inlined_call_operand.vmem [shape: f32[1,64], index: 12, kind: input, shape index: {}]   ;;  %s3161_s13 = inlined_call_operand.vmem [shape: bf16[64,32], index: 13, kind: input, shape index: {}]   ;;  %s3162_s14 = inlined_call_operand.vmem [shape: f32[1,32], index: 14, kind: input, shape index: {}]   ;;  %s3163_s15 = inlined_call_operand.vmem [shape: f32[1,32], index: 15, kind: input, shape index: {}]   ;;  %s3164_s16 = inlined_call_operand.vmem [shape: f32[1,32], index: 16, kind: input, shape index: {}]   ;;  %s3165_s17 = inlined_call_operand.vmem [shape: f32[1,32], index: 17, kind: input, shape index: {}]   ;;  %s3166_s18 = inlined_call_operand.vmem [shape: f32[1,32], index: 18, kind: input, shape index: {}]   ;;  %s3167_s19 = inlined_call_operand.hbm [shape: f32[2,16,32], index: 19, kind: output, shape index: {}, may-alias: {0,19}]  }
   0x1   :  { %3183 = sst [smem:[#allocation26_spill]] %s3148_s0 }
   0x2   :  { %3184 = sst [smem:[#allocation27_spill]] %s3149_s1 }
   0x3   :  { %3185 = sst [smem:[#allocation28_spill]] %s3150_s2 }
   0x4   :  { %3186 = sst [smem:[#allocation29_spill]] %s3151_s3 }
   0x5   :  { %3187 = sst [smem:[#allocation30_spill]] %s3155_s7 }
   0x6   :  { %3188 = sst [smem:[#allocation31_spill]] %s3156_s8 }
   0x7   :  { %3189 = sst [smem:[#allocation32_spill]] %s3157_s9 }
   0x8   :  { %3190 = sst [smem:[#allocation33_spill]] %s3159_s11 }
   0x9   :  { %3191 = sst [smem:[#allocation34_spill]] %s3160_s12 }
   0xa   :  { %3192 = sst [smem:[#allocation35_spill]] %s3161_s13 }
   0xb   :  { %3193 = sst [smem:[#allocation36_spill]] %s3162_s14 }
   0xc   :  { %3194 = sst [smem:[#allocation37_spill]] %s3163_s15 }
   0xd   :  { %3195 = sst [smem:[#allocation38_spill]] %s3164_s16 }
   0xe   :  { %3196 = sst [smem:[#allocation39_spill]] %s3165_s17 }
   0xf   :  { %3197 = sst [smem:[#allocation40_spill]] %s3166_s18 }
  0x10   :  { %3198 = sst [smem:[#allocation41_spill]] %s3167_s19 }
  0x11   :  { %24 = vsyncpa [#allocation3], 0 }
  0x12   :  { %26 = vsyncpa [#allocation3 + $0x1], 0 }
  0x13   :  { %27 = vsyncpa [#allocation6], 0 }
  0x14   :  { %29 = vsyncpa [#allocation6 + $0x1], 0 }
  0x15   :  { %30 = vsyncpa [#allocation9], 0 }
  0x16   :  { %31 = vsyncpa [#allocation4], 0 }
  0x17   :  { %33 = vsyncpa [#allocation4 + $0x1], 0  ;;  %s2698_s0 = smov 0   ;;  %s2700_s30 = smov 0  }
  0x18   :  { %s2702_s20 = smov 0   ;;  %s2704_s21 = smov 0  }
  0x19   :  { %s2706_s1 = smov 0   ;;  %s2708_s22 = smov 0  }
  0x1a   :  { %s2710_s2 = smov 0   ;;  %s2712_s23 = smov 0  }
  0x1b LB: > { %3199 = sst [smem:[#allocation17_spill]] %s2551_s0  ;;  %s2739_s24 = sadd.s32 4294967295, %s2579_s23   ;;  %s2579_s23 = sphi %s2712_s23, %s39_s23   ;;  %s2575_s2 = sphi %s2710_s2, %s3250_s2   ;;  %s2571_s22 = sphi %s2708_s22, %s3245_s22   ;;  %s2567_s1 = sphi %s2706_s1, %s3249_s1   ;;  %s2563_s21 = sphi %s2704_s21, %s3244_s21   ;;  %s2559_s20 = sphi %s2702_s20, %s3243_s20   ;;  %s2555_s30 = sphi %s2700_s30, %s3248_s30   ;;  %s2551_s0 = sphi %s2698_s0, %s3247_s0  }
  0x1c   : > { %3200 = sst [smem:[#allocation18_spill]] %s2559_s20  ;;  %s1941_s25 = sadd.s32 4294967294, %s2579_s23  }
  0x1d   : > { %3201 = sst [smem:[#allocation19_spill]] %s2571_s22  ;;  %p71_p0 = scmp.ne.s32.totalorder %s2555_s30, %s2551_s0 }
  0x1e   : > { %3202 = sst [smem:[#allocation20_spill]] %s2579_s23  ;;  %p3172_p1 = scmp.eq.s32.totalorder %s2739_s24, 0 }
  0x1f   : > { %p489_p3 = scmp.eq.s32.totalorder %s1941_s25, 3  ;;  %p1942_p5 = scmp.ge.s32.totalorder %s2579_s23, 1 }
  0x20   : > { %p2748_p4 = por %p3172_p1, %p71_p0  ;;  %p496_p7 = scmp.lt.s32.totalorder %s2579_s23, 5 }
  0x21   : > { %p2753_p6 = por %p489_p3, %p71_p0  ;;  %s2581_s28 = smov [#allocation7]  }
  0x22   : > { %s3203_s3 = scalar_select %p2748_p4, 1, 0 }
  0x23   : > { %s3204_s26 = scalar_select %p2753_p6, 1, 0 }
  0x24   : > { %p2758_p8 = pnand %p1942_p5, %p496_p7  ;;  %s521_s29 = sshll.u32 %s2581_s28, 4  ;;  %s522_s29 = int_to_ptr.vmem [resolvable:$true] %s521_s29 }
  0x25   : > { %3205 = sst [smem:[#allocation21_spill]] %s3204_s26  ;;  %s2582_s25 = smov [#allocation8]  }
  0x26   : > { %p2161_p9 = pneg %p2758_p8  ;;  %s532_s0 = sshll.u32 %s2582_s25, 4  ;;  %s533_s0 = int_to_ptr.vmem [resolvable:$true] %s532_s0 }
  0x27   : > { %s2583_s26 = smov [#allocation10]   ;;  %s2348_s28 = scalar_lea.vmem %s522_s29, 16 }
  0x28   : > { %p2766_p10 = pnand %p2161_p9, %p3172_p1  ;;  %s543_s18 = sshll.u32 %s2583_s26, 4  ;;  %s2770_s18 = int_to_ptr.vmem [resolvable:$true] %s543_s18 }
  0x29   : > { %p2349_p12 = scmp.ne.s32.totalorder %s522_s29, %s2348_s28  ;;  %s2355_s25 = scalar_lea.vmem %s522_s29, 32 }
  0x2a   : > { %p2339_p11 = pneg %p2766_p10  ;;  %p2356_p3 = scmp.lt.s32.totalorder %s522_s29, %s522_s29 }
  0x2b   : > { %p2357_p5 = scmp.lt.s32.totalorder %s2355_s25, %s2348_s28 }
  0x2c   : > { %p2351_p13 = pnand %p2349_p12, %p2339_p11 }
  0x2d   : > { %p2358_p7 = por %p2357_p5, %p2356_p3 }
  0x2e   : > { %p2352_p0 = pneg %p2351_p13 }
  0x30   : > { %p2359_p9 = pnand %p2358_p7, %p2352_p0 }
  0x32   : > { %2362 = shalt.err (!%p2359_p9)
}
  0x33   : > { %s3208_s7 = sld [smem:[#allocation30_spill]]  ;;  %s2374_s14 = scalar_lea.vmem %s533_s0, 16 }
  0x34   : > { %p2375_p1 = scmp.ne.s32.totalorder %s533_s0, %s2374_s14  ;;  %s2381_s12 = scalar_lea.vmem %s533_s0, 32 }
  0x35   : > { %p2382_p13 = scmp.lt.s32.totalorder %s533_s0, %s533_s0  ;;  %p2383_p6 = scmp.lt.s32.totalorder %s2381_s12, %s2374_s14 }
  0x36   : > { %p2377_p2 = pnand %p2375_p1, %p2339_p11 }
  0x37   : > { %p2384_p4 = por %p2383_p6, %p2382_p13 }
  0x38   : > { %p2378_p12 = pneg %p2377_p2 }
  0x39   : > { %2164 = dma.hbm_to_vmem [thread:$0]  (!%p2766_p10), %s3208_s7, 16, %s522_s29, [#allocation6]  }
  0x3a   : > { %p2385_p3 = pnand %p2384_p4, %p2378_p12 }
  0x3c   : > { %2388 = shalt.err (!%p2385_p3)
}
  0x3d   : > { %s3209_s8 = sld [smem:[#allocation31_spill]]  ;;  %s2400_s17 = scalar_lea.vmem %s2770_s18, 16 }
  0x3e   : > { %p2401_p1 = scmp.ne.s32.totalorder %s2770_s18, %s2400_s17  ;;  %s2407_s12 = scalar_lea.vmem %s2770_s18, 32 }
  0x3f   : > { %p2408_p4 = scmp.lt.s32.totalorder %s2770_s18, %s2770_s18  ;;  %p2409_p6 = scmp.lt.s32.totalorder %s2407_s12, %s2400_s17 }
  0x40   : > { %p2403_p2 = pnand %p2401_p1, %p2339_p11 }
  0x41   : > { %p2410_p5 = por %p2409_p6, %p2408_p4 }
  0x42   : > { %p2404_p0 = pneg %p2403_p2 }
  0x43   : > { %2167 = dma.hbm_to_vmem [thread:$0]  (!%p2766_p10), %s3209_s8, 16, %s533_s0, [#allocation9]  }
  0x44   : > { %p2411_p7 = pnand %p2410_p5, %p2404_p0 }
  0x46   : > { %2414 = shalt.err (!%p2411_p7)
}
  0x47   : > { %s3210_s9 = sld [smem:[#allocation32_spill]]  ;;  %s48_s0 = sadd.s32 1, %s2571_s22 }
  0x48   : > { %p49_p11 = scmp.ge.s32.totalorder %s48_s0, 2  ;;  %s51_s19 = sadd.s32 1, %s2575_s2 }
  0x49   : > { %s58_s26 = sadd.s32 1, %s2559_s20  ;;  %p65_p9 = scmp.ne.s32.totalorder %s2559_s20, %s2555_s30 }
  0x4a   : > { %s3252_s0 = smov (%p49_p11, %s48_s0), 0  ;;  %s3254_s19 = smov (!%p49_p11, %s51_s19), %s2575_s2 }
  0x4b   : > { %3211 = sst [smem:[#allocation22_spill]] %s3252_s0  ;;  %p66_p12 = scmp.eq.s32.totalorder %s2579_s23, 0 }
  0x4c   : > { %p3212_p13 = scmp.eq.s32.totalorder %s2739_s24, 3  ;;  %p2185_p1 = scmp.lt.s32.totalorder %s2579_s23, 4 }
  0x4d   : > { %2170 = dma.hbm_to_vmem [thread:$0]  (!%p2766_p10), %s3210_s9, 16, %s2770_s18, [#allocation9]  }
  0x4e   : > { %p2815_p3 = por %p3212_p13, %p65_p9  ;;  %p53_p10 = scmp.ge.s32.totalorder %s3254_s19, 2 }
  0x4f   : > { %p67_p2 = por %p66_p12, %p65_p9  ;;  %s2821_s18 = sand.u32 1, %s2559_s20  }
  0x50   : > { %s3213_s28 = scalar_select %p2815_p3, 1, 0 }
  0x51   : > { %s3256_s19 = smov (%p53_p10, %s3254_s19), 0  ;;  %s1947_s25 = sshll.u32 %s2821_s18, 4 }
  0x52   : > { %3214 = sst [smem:[#allocation23_spill]] %s3213_s28  ;;  %s55_s17 = ssub.s32 %s2575_s2, %s3256_s19 }
  0x53   : > { %3215 = sst [smem:[#allocation24_spill]] %s3256_s19  ;;  %p56_p0 = scmp.eq.s32.totalorder %s55_s17, 0 }
  0x54   : > { %s2004_s12 = sshll.u32 %s2575_s2, 8  ;;  %s3216_s7 = sld [smem:[#allocation26_spill]] }
  0x55   : > { %s585_s9 = scalar_lea.vmem [#allocation2], %s1947_s25  ;;  %p2837_p4 = pnand %p2185_p1, %p67_p2 }
  0x56   : > { %s592_s0 = sshll.u32 %s585_s9, 4  ;;  %s610_s16 = sand.u32 1, %s2579_s23   ;;  %s593_s0 = int_to_ptr.vmem [resolvable:$true] %s592_s0 }
  0x57   : > { %s2833_s22 = scalar_select %p56_p0, %s2559_s20, %s58_s26  }
  0x58   : > { %s582_s19 = scalar_lea.sflag [#allocation3], %s2821_s18  ;;  %p2417_p6 = pneg %p2837_p4 }
  0x59   : > { %3217 = sst [smem:[#allocation25_spill]] %s2833_s22  ;;  %s2428_s17 = scalar_lea.vmem %s593_s0, 256 }
  0x5a   : > { %s591_s8 = scalar_lea.hbm %s3216_s7, %s2004_s12  ;;  %p2429_p5 = scmp.ne.s32.totalorder %s593_s0, %s2428_s17 }
  0x5b   : > { %s2584_s7 = smov [#allocation2]  }
  0x5c   : > { %p2431_p7 = pnand %p2429_p5, %p2417_p6  ;;  %s2433_s9 = sshll.u32 %s2584_s7, 4  ;;  %s2434_s9 = int_to_ptr.vmem [resolvable:$false] %s2433_s9 }
  0x5d   : > { %s2435_s26 = scalar_lea.vmem %s2434_s9, 512  ;;  %p2436_p9 = scmp.lt.s32.totalorder %s593_s0, %s2434_s9 }
  0x5e   : > { %p2432_p11 = pneg %p2431_p7  ;;  %p2437_p12 = scmp.lt.s32.totalorder %s2435_s26, %s2428_s17 }
  0x60   : > { %p2438_p13 = por %p2437_p12, %p2436_p9 }
  0x62   : > { %p2439_p10 = pnand %p2438_p13, %p2432_p11 }
  0x64   : > { %2442 = shalt.err (!%p2439_p10)
}
  0x65   : > { %s2585_s25 = smov 128   ;;  %s2586_s12 = smov 8  }
  0x66   : > { %2174 = dma.hbm_to_vmem [thread:$0]  (!%p2837_p4), %s591_s8, 256, %s593_s0, %s582_s19, %s2585_s25, %s2585_s25, %s2586_s12  }
  0x67   : > { %s1950_s14 = sshll.u32 %s2575_s2, 4  ;;  %s613_s29 = scalar_lea.vmem [#allocation5], %s2821_s18 }
  0x68   : > { %s620_s22 = sshll.u32 %s613_s29, 4  ;;  %s3219_s23 = sld [smem:[#allocation28_spill]]  ;;  %s621_s22 = int_to_ptr.vmem [resolvable:$true] %s620_s22 }
  0x69   : > { %s611_s17 = scalar_lea.sflag [#allocation6], %s610_s16  ;;  %s2456_s9 = scalar_lea.vmem %s621_s22, 16 }
  0x6a   : > { %p2457_p1 = scmp.ne.s32.totalorder %s621_s22, %s2456_s9  ;;  %s2587_s26 = smov [#allocation5]  }
  0x6b   : > { %s2461_s13 = sshll.u32 %s2587_s26, 4  ;;  %s2462_s13 = int_to_ptr.vmem [resolvable:$false] %s2461_s13 }
  0x6c   : > { %p2459_p2 = pnand %p2457_p1, %p2417_p6  ;;  %s2463_s11 = scalar_lea.vmem %s2462_s13, 32 }
  0x6d   : > { %p2464_p5 = scmp.lt.s32.totalorder %s621_s22, %s2462_s13  ;;  %p2465_p7 = scmp.lt.s32.totalorder %s2463_s11, %s2456_s9 }
  0x6e   : > { %s618_s15 = scalar_lea.hbm %s3219_s23, %s1950_s14  ;;  %p2460_p0 = pneg %p2459_p2 }
  0x6f   : > { %p2466_p11 = por %p2465_p7, %p2464_p5 }
  0x71   : > { %p2467_p9 = pnand %p2466_p11, %p2460_p0 }
  0x73   : > { %2470 = shalt.err (!%p2467_p9)
}
  0x74   : > { %2177 = dma.hbm_to_vmem [thread:$0]  (!%p2837_p4), %s618_s15, 16, %s621_s22, %s611_s17  }
  0x75   : > { %629 = sbr.rel (%p2758_p8) target bundleno = 2564 (0xa04), region = 96  ;;  %s2863_s8 = sand.u32 (!%p2758_p8), 1, %s2555_s30  }
  0x76   : > { %s1952_s16 = sshll.u32 (!%p2758_p8), %s2863_s8, 4  ;;  %s632_s20 = scalar_lea.sflag (!%p2758_p8), [#allocation3], %s2863_s8 }
  0x77   : > { %s635_s23 = scalar_lea.vmem (!%p2758_p8), [#allocation2], %s1952_s16  ;;  %p3220_p6 = scmp.ne.s32.totalorder (!%p2758_p8), %s3203_s3, 0 }
  0x7a   : > { %2530 = dma.done.wait (%p3220_p6), %s632_s20, 256  }
  0x7b   : > { %2532 = vsyncadd (%p3220_p6), %s632_s20, 4294967040  ;;  %s640_s11 = sand.u32 1, %s2739_s24   ;;  %s643_s15 = scalar_lea.vmem [#allocation5], %s2863_s8 }
  0x7c   : > { %s641_s13 = scalar_lea.sflag [#allocation6], %s640_s11 }
  0x7d   : > { %2534 = dma.done.wait (%p3220_p6), %s641_s13, 16  }
  0x7e   : > { %2536 = vsyncadd (%p3220_p6), %s641_s13, 4294967280  ;;  %p3221_p8 = scmp.eq.s32.totalorder %s2739_s24, 0 }
  0x80   : > { %2538 = dma.done.wait (%p3221_p8), [#allocation6], 16   ;;  %p3222_p4 = pmov %p3221_p8 }
  0x82   : > { %2540 = vsyncadd (%p3222_p4), [#allocation6], 4294967280  ;;  %p3223_p12 = pmov %p3222_p4 }
  0x83   : > { %p3224_p13 = pmov %p3222_p4 }
  0x84   : > { %2542 = dma.done.wait (%p3223_p12), [#allocation9], 32  }
  0x85   : > { %2544 = vsyncadd (%p3224_p13), [#allocation9], 4294967264  ;;  %p719_p10 = scmp.lt.s32.totalorder %s2567_s1, 1  ;;  %s3225_s19 = sld [smem:[#allocation27_spill]] }
  0x86   : > { %s2890_s18 = scalar_lea.vmem [#allocation11], %s1952_s16  ;;  %p1959_p1 = scmp.ne.s32.totalorder %s2563_s21, 0 }
  0x87   : > { %s720_s22 = scalar_select %p719_p10, %s2567_s1, 1 }
  0x88   : > { %728 = sbr.rel (%p1959_p1) target bundleno = 143 (0x8f), region = 120 }
  0x89   : > { %s2005_s27 = sshll.u32 %s720_s22, 4 }
  0x8b   : > { %s723_s28 = scalar_lea.vmem %s3225_s19, %s2005_s27 }
  0x8d   : > { %v729_v0 = vld [vmem:[%s635_s23] sm:$0xff]  ;;  %vm731_vm0 = vcmask 261120   ;;  %v730_v1 = vld [vmem:[%s635_s23 + $0x8] sm:$0xff] }
  0x8e   : > { %732 = vst.msk [vmem:[%s2890_s18] sm:$0xff] %vm731_vm0, %v729_v0  ;;  %733 = vst.msk [vmem:[%s2890_s18 + $0x8] sm:$0xff] %vm731_vm0, %v730_v1 }
  0x8f PF: > { %v2283_v2 = vld [vmem:[%s3152_s4 + $0x8] sm:$0xff]   ;;  %v2588_v3 = vmov 0.0   ;;  %s3226_s14 = sld [smem:[#allocation29_spill]]  ;;  %v2285_v5 = vld [vmem:[%s3152_s4] sm:$0xff]   ;;  %vm2589_vm1 = vmmov 0   ;;  %vm766_vm2 = vcmask 261120  }
  0x90   : > { %2051 = vmatprep.subr.bf16.mxu1 %v2588_v3  ;;  %2043 = vmatprep.subr.bf16.mxu0 %v2588_v3  ;;  %v736_v9 = vld [vmem:[%s723_s28] sm:$0xff]  ;;  %v737_v10 = vld [vmem:[%s723_s28 + $0x8] sm:$0xff]  ;;  %vm951_vm3 = vcmask 64512   ;;  %s2590_s26 = smov 112   ;;  %s2591_s16 = smov 120   ;;  %vm999_vm4 = vcmask 130048  }
  0x91   : > { %2052 = vmatpush3.bf16.msra.mxu1 %v2283_v2  ;;  %2055 = vmatprep.mubr.msk.bf16.mxu1 %vm2589_vm1, %v2588_v3  ;;  %v1964_v16 = vld [vmem:[#allocation8] ss:$0 sm:$0xff]  ;;  %v1960_v17 = vld [vmem:[#allocation7] ss:$0 sm:$0xff]  ;;  %s2592_s20 = smov 104   ;;  %v2287_v31 = vld [vmem:[%s3153_s5 + $0x8] sm:$0xff]  }
  0x92   : > { %2053 = vmatprep.subr.bf16.mxu1 %v2588_v3  ;;  %2047 = vmatprep.mubr.msk.bf16.mxu0 %vm2589_vm1, %v2588_v3  ;;  %v2288_v32 = vld [vmem:[%s3153_s5] sm:$0xff]   ;;  %s2593_s0 = smov 8   ;;  %s2594_s28 = smov 16   ;;  %vm1461_vm5 = vcmask 195584   ;;  %vm1689_vm6 = vcmask 523264  }
  0x93   : > { %v1972_v43 = vld [vmem:[%s643_s15] ss:$0 sm:$0xff]  ;;  %v1968_v52 = vld [vmem:[#allocation10] ss:$0 sm:$0xff]  ;;  %s2595_s24 = smov 24   ;;  %s3227_s7 = sld [smem:[#allocation33_spill]] }
  0x94   : > { %s3230_s22 = sld [smem:[#allocation37_spill]]  ;;  %s1783_s17 = scalar_lea.sflag [#allocation4], %s2863_s8 }
  0x95   : > { %v2284_v4 = vld [vmem:[%s3226_s14 + $0x8] sm:$0xff]   ;;  %v2286_v6 = vld [vmem:[%s3226_s14] sm:$0xff]   ;;  %2054 = vmatpush3.bf16.msra.mxu1 %v2285_v5  ;;  %s3231_s3 = sld [smem:[#allocation38_spill]] }
  0x96   : > { %2044 = vmatpush3.bf16.msra.mxu0 %v2284_v4  ;;  %v2914_v7 = vld [vmem:[%s2890_s18] sm:$0xff]  ;;  %v2917_v8 = vld [vmem:[%s2890_s18 + $0x8] sm:$0xff]  ;;  %2067 = vmatprep.subr.bf16.mxu1 %v2588_v3  ;;  %s3232_s9 = sld [smem:[#allocation34_spill]] }
  0x97   : > { %2045 = vmatprep.subr.bf16.mxu0 %v2588_v3  ;;  %v739_v11 = vadd.f32 %v736_v9, %v2914_v7  ;;  %v740_v12 = vadd.f32 %v737_v10, %v2917_v8  ;;  %v742_v33 = vpack.c.bf16 %v2917_v8, %v2914_v7  ;;  %s3237_s12 = sld [smem:[#allocation41_spill]] }
  0x99   : > { %v741_v13 = vpack.c.bf16 %v740_v12, %v739_v11 }
  0x9a   : > { %2046 = vmatpush3.bf16.msra.mxu0 %v2286_v6 }
  0x9b   : > { %2059 = vmatprep.subr.bf16.mxu0 %v2588_v3  ;;  %2056 = vmatmul.mubr.msk.bf16.vlgmr.msra.gmra.mxu1 %vm766_vm2, %v741_v13 }
  0x9c   : > { %2069 = vmatprep.mubr.msk.bf16.mxu1 %vm2589_vm1, %v2588_v3 }
  0x9d   : > { %2048 = vmatmul.mubr.msk.bf16.vlgmr.msra.gmra.mxu0 %vm766_vm2, %v741_v13 }
  0x9e   : > { %2063 = vmatprep.mubr.msk.bf16.mxu0 %vm2589_vm1, %v2588_v3  ;;  %2060 = vmatpush3.bf16.msra.mxu0 %v2287_v31 }
  0x9f   : > { %2061 = vmatprep.subr.bf16.mxu0 %v2588_v3 }
  0xa2   : > { %2062 = vmatpush3.bf16.msra.mxu0 %v2288_v32 }
  0xa3   : > { %2073 = vmatprep.subr.bf16.mxu0 %v2588_v3 }
  0xa5   : > { %2064 = vmatmul.mubr.msk.bf16.vlgmr.msra.gmra.mxu0 %vm766_vm2, %v742_v33 }
  0xa6   : > { %2075 = vmatprep.mubr.msk.bf16.mxu0 %vm2589_vm1, %v2588_v3 }
 0x15b   : > { %v868_v14 = vpop.f32.mrf.mxu1 }
 0x15c   : > { %v869_v22 = vadd.f32 %v1964_v16, %v868_v14 }
 0x15d   : > { %v804_v15 = vpop.f32.mrf.mxu0  ;;  %v2057_v18 = vpop.f32.mrf.mxu1 }
 0x15e   : > { %v805_v23 = vadd.f32 %v1960_v17, %v804_v15 }
 0x15f   : > { %v2049_v19 = vpop.f32.mrf.mxu0  ;;  %v871_v20 = vpop.f32.mrf.mxu1 }
 0x160   : > { %v872_v24 = vadd.f32 %v1964_v16, %v871_v20 }
 0x161   : > { %v807_v21 = vpop.f32.mrf.mxu0  ;;  %v2058_v26 = vpop.f32.mrf.mxu1 }
 0x162   : > { %v808_v25 = vadd.f32 %v1960_v17, %v807_v21  ;;  %v943_v28 = vpack.c.bf16 %v872_v24, %v869_v22 }
 0x163   : > { %v2050_v27 = vpop.f32.mrf.mxu0 }
 0x164   : > { %v942_v29 = vpack.c.bf16 %v808_v25, %v805_v23  ;;  %1193 = vrot.lane.b32.xlu1 %v943_v28, %s2590_s26  ;;  %1071 = vrot.lane.b32.xlu0 %v943_v28, %s2591_s16  ;;  %v956_v30 = vsel %vm951_vm3, %v943_v28, 0 }
 0x165   : > { %2068 = vmatpush3.bf16.xpose.msra.mxu1 %v956_v30  ;;  %v935_v53 = vpop.f32.mrf.mxu0 }
 0x166   : > { %2079 = vmatprep.subr.bf16.mxu1 %v2588_v3  ;;  %v936_v55 = vadd.f32 %v1968_v52, %v935_v53 }
 0x167   : > { %v2065_v54 = vpop.f32.mrf.mxu0 }
 0x168   : > { %1191 = vrot.lane.b32.xlu1 %v942_v29, %s2590_s26  ;;  %1068 = vrot.lane.b32.xlu0 %v942_v29, %s2591_s16 }
 0x169   : > { %v938_v56 = vpop.f32.mrf.mxu0 }
 0x16a   : > { %v939_v57 = vadd.f32 %v1968_v52, %v938_v56 }
 0x16b   : > { %v2066_v58 = vpop.f32.mrf.mxu0 }
 0x16c   : > { %1312 = vrot.lane.b32.xlu1 %v942_v29, %s2592_s20  ;;  %1314 = vrot.lane.b32.xlu0 %v943_v28, %s2592_s20  ;;  %v2974_v59 = vpack.c.bf16 %v939_v57, %v936_v55 }
 0x16d   : > { %2070 = vmatmul.mubr.msk.bf16.vlgmr.msra.gmra.mxu1 %vm951_vm3, %v942_v29 }
 0x16e   : > { %2081 = vmatprep.mubr.msk.bf16.mxu1 %vm2589_vm1, %v2588_v3  ;;  %2074 = vmatpush3.bf16.msra.mxu0 %v2974_v59 }
 0x16f   : > { %2085 = vmatprep.subr.bf16.mxu0 %v2588_v3 }
 0x1d6   : > { %v1072_v34 = vpop.permute.xlu0 %1071  ;;  %v1194_v36 = vpop.permute.xlu1 %1193 }
 0x1d7   : > { %v1077_v35 = vsel %vm951_vm3, %v1072_v34, 0  ;;  %v1199_v38 = vsel %vm951_vm3, %v1194_v36, 0 }
 0x1d8   : > { %2080 = vmatpush3.bf16.xpose.msra.mxu1 %v1077_v35 }
 0x1d9   : > { %2091 = vmatprep.subr.bf16.mxu1 %v2588_v3 }
 0x1da   : > { %v1069_v37 = vpop.permute.xlu0 %1068  ;;  %v1192_v40 = vpop.permute.xlu1 %1191 }
 0x1de   : > { %v1315_v39 = vpop.permute.xlu0 %1314  ;;  %v1313_v42 = vpop.permute.xlu1 %1312 }
 0x1df   : > { %2082 = vmatmul.mubr.msk.bf16.vlgmr.msra.gmra.mxu1 %vm951_vm3, %v1069_v37  ;;  %v1320_v41 = vsel %vm951_vm3, %v1315_v39, 0 }
 0x1e0   : > { %2092 = vmatpush3.bf16.xpose.msra.mxu1 %v1199_v38  ;;  %2093 = vmatprep.mubr.msk.bf16.mxu1 %vm2589_vm1, %v2588_v3 }
 0x1e1   : > { %2103 = vmatprep.subr.bf16.mxu1 %v2588_v3 }
 0x1e7   : > { %2094 = vmatmul.mubr.msk.bf16.vlgmr.msra.gmra.mxu1 %vm951_vm3, %v1192_v40 }
 0x1e8   : > { %2104 = vmatpush3.bf16.xpose.msra.mxu1 %v1320_v41  ;;  %2105 = vmatprep.mubr.msk.bf16.mxu1 %vm2589_vm1, %v2588_v3 }
 0x1e9   : > { %2115 = vmatprep.subr.bf16.mxu1 %v2588_v3 }
 0x1ef   : > { %2106 = vmatmul.mubr.msk.bf16.vlgmr.msra.gmra.mxu1 %vm951_vm3, %v1313_v42 }
 0x1f0   : > { %2119 = vmatprep.mubr.msk.bf16.mxu1 %vm2589_vm1, %v2588_v3 }
 0x22d   : > { %v992_v44 = vpop.f32.mrf.mxu1 }
 0x22e   : > { %v993_v45 = vadd.f32 %v1972_v43, %v992_v44 }
 0x22f   : > { %v2071_v46 = vpop.f32.mrf.mxu1 }
 0x230   : > { %v1000_v47 = vsel %vm999_vm4, %v993_v45, -inf }
 0x231   : > { %1001 = vmax.xlane.f32.xlu0 %v1000_v47  ;;  %v995_v48 = vpop.f32.mrf.mxu1 }
 0x232   : > { %v996_v49 = vadd.f32 %v1972_v43, %v995_v48 }
 0x233   : > { %v2072_v50 = vpop.f32.mrf.mxu1 }
 0x234   : > { %v1003_v51 = vsel %vm999_vm4, %v996_v49, -inf }
 0x235   : > { %1004 = vmax.xlane.f32.xlu1 %v1003_v51 }
 0x29f   : > { %v1113_v60 = vpop.f32.mrf.mxu1 }
 0x2a0   : > { %v1114_v61 = vadd.f32 %v1972_v43, %v1113_v60 }
 0x2a1   : > { %v2083_v62 = vpop.f32.mrf.mxu1 }
 0x2a2   : > { %v1120_v63 = vsel %vm999_vm4, %v1114_v61, -inf }
 0x2a3   : > { %1121 = vmax.xlane.f32.xlu0 %v1120_v63  ;;  %v1116_v0 = vpop.f32.mrf.mxu1 }
 0x2a4   : > { %v1117_v1 = vadd.f32 %v1972_v43, %v1116_v0 }
 0x2a5   : > { %v2084_v2 = vpop.f32.mrf.mxu1 }
 0x2a6   : > { %v1123_v4 = vsel %vm999_vm4, %v1117_v1, -inf }
 0x2a7   : > { %1124 = vmax.xlane.f32.xlu0 %v1123_v4  ;;  %v1235_v5 = vpop.f32.mrf.mxu1 }
 0x2a8   : > { %v1236_v6 = vadd.f32 %v1972_v43, %v1235_v5 }
 0x2a9   : > { %v2095_v9 = vpop.f32.mrf.mxu1 }
 0x2aa   : > { %v1242_v10 = vsel %vm999_vm4, %v1236_v6, -inf }
 0x2ab   : > { %1243 = vmax.xlane.f32.xlu1 %v1242_v10  ;;  %v1238_v11 = vpop.f32.mrf.mxu1 }
 0x2ac   : > { %v1239_v12 = vadd.f32 %v1972_v43, %v1238_v11 }
 0x2ad   : > { %v2096_v13 = vpop.f32.mrf.mxu1 }
 0x2ae   : > { %v1245_v14 = vsel %vm999_vm4, %v1239_v12, -inf }
 0x2af   : > { %1246 = vmax.xlane.f32.xlu0 %v1245_v14  ;;  %v1356_v15 = vpop.f32.mrf.mxu1 }
 0x2b0   : > { %v1357_v16 = vadd.f32 %v1972_v43, %v1356_v15 }
 0x2b1   : > { %v2107_v17 = vpop.f32.mrf.mxu1 }
 0x2b2   : > { %v1363_v18 = vsel %vm999_vm4, %v1357_v16, -inf }
 0x2b3   : > { %1364 = vmax.xlane.f32.xlu1 %v1363_v18  ;;  %v1359_v19 = vpop.f32.mrf.mxu1 }
 0x2b4   : > { %v1360_v20 = vadd.f32 %v1972_v43, %v1359_v19 }
 0x2b5   : > { %v2108_v21 = vpop.f32.mrf.mxu1 }
 0x2b6   : > { %v1366_v22 = vsel %vm999_vm4, %v1360_v20, -inf }
 0x2b7   : > { %1367 = vmax.xlane.f32.xlu0 %v1366_v22 }
 0x2ba   : > { %v1002_v23 = vpop.xlane.xlu0 %1001 }
 0x2bb   : > { %v1006_v24 = vsub.f32 %v993_v45, %v1002_v23 }
 0x2bd   : > { %v1008_v25 = vmul.f32 1.442695, %v1006_v24 }
 0x2be   : > { %v1005_v26 = vpop.xlane.xlu1 %1004 }
 0x2bf   : > { %2297 = vpow2.f32 %v1008_v25  ;;  %v1007_v27 = vsub.f32 %v996_v49, %v1005_v26 }
 0x2c1   : > { %v1010_v28 = vmul.f32 1.442695, %v1007_v27 }
 0x2c3   : > { %2299 = vpow2.f32 %v1010_v28 }
 0x2cc   : > { %v2298_v29 = vpop.eup %2297 }
 0x2cd   : > { %v1012_v30 = vsel %vm999_vm4, %v2298_v29, 0.0 }
 0x2ce   : > { %1013 = vadd.xlane.f32.xlu1 %v1012_v30 }
 0x2d0   : > { %v2300_v31 = vpop.eup %2299 }
 0x2d1   : > { %v1015_v32 = vsel %vm999_vm4, %v2300_v31, 0.0 }
 0x2d2   : > { %1016 = vadd.xlane.f32.xlu0 %v1015_v32 }
 0x2df   : > { %1144 = vrot.lane.b32.xlu1 %v2974_v59, %s2591_s16 }
 0x32c   : > { %v1122_v33 = vpop.xlane.xlu0 %1121 }
 0x32d   : > { %v1126_v34 = vsub.f32 %v1114_v61, %v1122_v33 }
 0x32f   : > { %v1128_v35 = vmul.f32 1.442695, %v1126_v34 }
 0x330   : > { %v1125_v36 = vpop.xlane.xlu0 %1124 }
 0x331   : > { %2301 = vpow2.f32 %v1128_v35  ;;  %v1127_v37 = vsub.f32 %v1117_v1, %v1125_v36 }
 0x333   : > { %v1130_v38 = vmul.f32 1.442695, %v1127_v37 }
 0x334   : > { %v1244_v39 = vpop.xlane.xlu1 %1243 }
 0x335   : > { %2303 = vpow2.f32 %v1130_v38  ;;  %v1248_v40 = vsub.f32 %v1236_v6, %v1244_v39 }
 0x337   : > { %v1250_v41 = vmul.f32 1.442695, %v1248_v40  ;;  %v2289_v40 = vld [vmem:[%s3154_s6 + $0x8] sm:$0xff]  }
 0x338   : > { %v1247_v42 = vpop.xlane.xlu0 %1246  ;;  %2116 = vmatpush3.bf16.msra.mxu1 %v2289_v40 }
 0x339   : > { %2305 = vpow2.f32 %v1250_v41  ;;  %v1249_v43 = vsub.f32 %v1239_v12, %v1247_v42  ;;  %2117 = vmatprep.subr.bf16.mxu1 %v2588_v3 }
 0x33b   : > { %v1252_v44 = vmul.f32 1.442695, %v1249_v43 }
 0x33c   : > { %v1365_v45 = vpop.xlane.xlu1 %1364 }
 0x33d   : > { %2307 = vpow2.f32 %v1252_v44  ;;  %v1369_v46 = vsub.f32 %v1357_v16, %v1365_v45  ;;  %v2290_v45 = vld [vmem:[%s3154_s6] sm:$0xff]  }
 0x33e   : > { %v2302_v47 = vpop.eup %2301  ;;  %2118 = vmatpush3.bf16.msra.mxu1 %v2290_v45 }
 0x33f   : > { %v1371_v48 = vmul.f32 1.442695, %v1369_v46  ;;  %v1132_v49 = vsel %vm999_vm4, %v2302_v47, 0.0  ;;  %2131 = vmatprep.subr.bf16.mxu1 %v2588_v3 }
 0x340   : > { %v1368_v50 = vpop.xlane.xlu0 %1367  ;;  %1133 = vadd.xlane.f32.xlu1 %v1132_v49 }
 0x341   : > { %2309 = vpow2.f32 %v1371_v48  ;;  %v1370_v51 = vsub.f32 %v1360_v20, %v1368_v50 }
 0x342   : > { %v2304_v52 = vpop.eup %2303 }
 0x343   : > { %v1373_v53 = vmul.f32 1.442695, %v1370_v51  ;;  %v1135_v54 = vsel %vm999_vm4, %v2304_v52, 0.0 }
 0x344   : > { %1136 = vadd.xlane.f32.xlu0 %v1135_v54 }
 0x345   : > { %2311 = vpow2.f32 %v1373_v53 }
 0x346   : > { %v2306_v55 = vpop.eup %2305 }
 0x347   : > { %v1254_v56 = vsel %vm999_vm4, %v2306_v55, 0.0 }
 0x348   : > { %1255 = vadd.xlane.f32.xlu1 %v1254_v56 }
 0x34a   : > { %v2308_v57 = vpop.eup %2307 }
 0x34b   : > { %v1257_v58 = vsel %vm999_vm4, %v2308_v57, 0.0 }
 0x34c   : > { %1258 = vadd.xlane.f32.xlu0 %v1257_v58 }
 0x34e   : > { %v2310_v60 = vpop.eup %2309 }
 0x34f   : > { %v1375_v61 = vsel %vm999_vm4, %v2310_v60, 0.0 }
 0x350   : > { %1376 = vadd.xlane.f32.xlu1 %v1375_v61 }
 0x352   : > { %v2312_v62 = vpop.eup %2311 }
 0x353   : > { %v1378_v63 = vsel %vm999_vm4, %v2312_v62, 0.0 }
 0x354   : > { %1379 = vadd.xlane.f32.xlu0 %v1378_v63 }
 0x357   : > { %v1014_v0 = vpop.xlane.xlu1 %1013 }
 0x358   : > { %2313 = vrcp.f32 %v1014_v0 }
 0x35b   : > { %v1017_v1 = vpop.xlane.xlu0 %1016  ;;  %v1145_v10 = vpop.permute.xlu1 %1144 }
 0x35c   : > { %2315 = vrcp.f32 %v1017_v1 }
 0x361   : > { %1386 = vrot.lane.b32.xlu1 %v2974_v59, %s2592_s20  ;;  %s3228_s20 = sld [smem:[#allocation35_spill]] }
 0x365   : > { %v2314_v2 = vpop.eup %2313 }
 0x366   : > { %v1020_v5 = vmul.f32 %v2314_v2, %v2298_v29 }
 0x367   : > { %s3229_s11 = smov %s3228_s20 }
 0x369   : > { %v2316_v4 = vpop.eup %2315 }
 0x36a   : > { %1265 = vrot.lane.b32.xlu0 %v2974_v59, %s2590_s26  ;;  %v1021_v6 = vmul.f32 %v2316_v4, %v2300_v31 }
 0x36c   : > { %v1022_v9 = vpack.c.bf16 %v1021_v6, %v1020_v5 }
 0x36e   : > { %2076 = vmatmul.mubr.msk.bf16.vlgmr.msra.gmra.mxu0 %vm999_vm4, %v1022_v9 }
 0x36f   : > { %2086 = vmatpush3.bf16.msra.mxu0 %v1145_v10  ;;  %2087 = vmatprep.mubr.msk.bf16.mxu0 %vm2589_vm1, %v2588_v3  ;;  %v1981_v10 = vld [vmem:[%s3158_s10] ss:$0 sm:$0xff] }
 0x370   : > { %2097 = vmatprep.subr.bf16.mxu0 %v2588_v3 }
 0x3c9   : > { %v1134_v11 = vpop.xlane.xlu1 %1133 }
 0x3ca   : > { %2317 = vrcp.f32 %v1134_v11 }
 0x3cd   : > { %v1137_v12 = vpop.xlane.xlu0 %1136 }
 0x3ce   : > { %2319 = vrcp.f32 %v1137_v12 }
 0x3d1   : > { %v1256_v13 = vpop.xlane.xlu1 %1255 }
 0x3d2   : > { %2321 = vrcp.f32 %v1256_v13 }
 0x3d5   : > { %v1259_v14 = vpop.xlane.xlu0 %1258 }
 0x3d6   : > { %2323 = vrcp.f32 %v1259_v14 }
 0x3d7   : > { %v2318_v59 = vpop.eup %2317 }
 0x3d8   : > { %v1140_v17 = vmul.f32 %v2318_v59, %v2302_v47 }
 0x3d9   : > { %v1377_v15 = vpop.xlane.xlu1 %1376 }
 0x3da   : > { %2325 = vrcp.f32 %v1377_v15 }
 0x3db   : > { %v2320_v16 = vpop.eup %2319 }
 0x3dc   : > { %v1141_v18 = vmul.f32 %v2320_v16, %v2304_v52 }
 0x3dd   : > { %v1380_v19 = vpop.xlane.xlu0 %1379  ;;  %v1387_v27 = vpop.permute.xlu1 %1386 }
 0x3de   : > { %2327 = vrcp.f32 %v1380_v19  ;;  %v1142_v20 = vpack.c.bf16 %v1141_v18, %v1140_v17 }
 0x3df   : > { %v2322_v21 = vpop.eup %2321 }
 0x3e0   : > { %2088 = vmatmul.mubr.msk.bf16.vlgmr.msra.gmra.mxu0 %vm999_vm4, %v1142_v20  ;;  %v1262_v24 = vmul.f32 %v2322_v21, %v2306_v55 }
 0x3e1   : > { %v1266_v22 = vpop.permute.xlu0 %1265  ;;  %2099 = vmatprep.mubr.msk.bf16.mxu0 %vm2589_vm1, %v2588_v3 }
 0x3e2   : > { %2098 = vmatpush3.bf16.msra.mxu0 %v1266_v22 }
 0x3e3   : > { %v2324_v23 = vpop.eup %2323  ;;  %2109 = vmatprep.subr.bf16.mxu0 %v2588_v3 }
 0x3e4   : > { %v1263_v25 = vmul.f32 %v2324_v23, %v2308_v57 }
 0x3e6   : > { %v1264_v26 = vpack.c.bf16 %v1263_v25, %v1262_v24 }
 0x3e7   : > { %v2326_v28 = vpop.eup %2325 }
 0x3e8   : > { %2100 = vmatmul.mubr.msk.bf16.vlgmr.msra.gmra.mxu0 %vm999_vm4, %v1264_v26  ;;  %v1383_v30 = vmul.f32 %v2326_v28, %v2310_v60 }
 0x3e9   : > { %2110 = vmatpush3.bf16.msra.mxu0 %v1387_v27  ;;  %2111 = vmatprep.mubr.msk.bf16.mxu0 %vm2589_vm1, %v2588_v3 }
 0x3ea   : > { %2123 = vmatprep.subr.bf16.mxu0 %v2588_v3 }
 0x3eb   : > { %v2328_v29 = vpop.eup %2327 }
 0x3ec   : > { %v1384_v31 = vmul.f32 %v2328_v29, %v2312_v62  ;;  %v2292_v29 = vld [vmem:[%s3227_s7] sm:$0xff]  }
 0x3ee   : > { %v1385_v32 = vpack.c.bf16 %v1384_v31, %v1383_v30  ;;  %v2293_v30 = vld [vmem:[%s3228_s20 + $0x18] sm:$0xff]   ;;  %s3233_s20 = sld [smem:[#allocation36_spill]] }
 0x3f0   : > { %2112 = vmatmul.mubr.msk.bf16.vlgmr.msra.gmra.mxu0 %vm999_vm4, %v1385_v32 }
 0x3f1   : > { %2127 = vmatprep.mubr.msk.bf16.mxu0 %vm2589_vm1, %v2588_v3 }
 0x42e   : > { %v1060_v33 = vpop.f32.mrf.mxu0 }
 0x430   : > { %v2077_v34 = vpop.f32.mrf.mxu0 }
 0x432   : > { %v1063_v35 = vpop.f32.mrf.mxu0 }
 0x434   : > { %v2078_v36 = vpop.f32.mrf.mxu0 }
 0x4a0   : > { %v1184_v37 = vpop.f32.mrf.mxu0 }
 0x4a2   : > { %v2089_v38 = vpop.f32.mrf.mxu0 }
 0x4a4   : > { %v1187_v39 = vpop.f32.mrf.mxu0 }
 0x4a5   : > { %v2268_v41 = vpack.i.bf16 %v1187_v39, %v1184_v37  ;;  %v1985_v39 = vld [vmem:[%s3230_s22] ss:$0 sm:$0xff]  ;;  %s3234_s22 = sld [smem:[#allocation39_spill]] }
 0x4a6   : > { %v2090_v42 = vpop.f32.mrf.mxu0 }
 0x4a7   : > { %2269 = vrot.lane.b32.xlu1 %v2268_v41, %s2593_s0 }
 0x4a8   : > { %v1305_v43 = vpop.f32.mrf.mxu0 }
 0x4aa   : > { %v2101_v44 = vpop.f32.mrf.mxu0 }
 0x4ac   : > { %v1308_v46 = vpop.f32.mrf.mxu0 }
 0x4ad   : > { %v2273_v47 = vpack.i.bf16 %v1308_v46, %v1305_v43  ;;  %v1986_v43 = vld [vmem:[%s3231_s3] ss:$0 sm:$0xff]  ;;  %s3235_s3 = sld [smem:[#allocation40_spill]] }
 0x4ae   : > { %v2102_v48 = vpop.f32.mrf.mxu0 }
 0x4af   : > { %2274 = vrot.lane.b32.xlu0 %v2273_v47, %s2594_s28  ;;  %v2294_v48 = vld [vmem:[%s3229_s11 + $0x10] sm:$0xff]   ;;  %s2006_s28 = sshll.u32 %s2567_s1, 8  ;;  %s2596_s1 = smov [#allocation11]  }
 0x4b0   : > { %v1426_v49 = vpop.f32.mrf.mxu0  ;;  %s3090_s29 = scalar_lea.hbm %s3237_s12, %s2006_s28  ;;  %s2475_s26 = sshll.u32 %s2596_s1, 4  ;;  %s2476_s26 = int_to_ptr.vmem [resolvable:$false] %s2475_s26 }
 0x4b1   : > { %s2477_s16 = scalar_lea.vmem %s2476_s26, 512 }
 0x4b2   : > { %v2113_v50 = vpop.f32.mrf.mxu0 }
 0x4b3   : > { %v2296_v50 = vld [vmem:[%s3229_s11] sm:$0xff]  }
 0x4b4   : > { %v1429_v51 = vpop.f32.mrf.mxu0 }
 0x4b5   : > { %v2278_v52 = vpack.i.bf16 %v1429_v51, %v1426_v49  ;;  %v2295_v49 = vld [vmem:[%s3229_s11 + $0x8] sm:$0xff]   ;;  %v1987_v51 = vld [vmem:[%s3232_s9] ss:$0 sm:$0xff] }
 0x4b6   : > { %v2114_v53 = vpop.f32.mrf.mxu0 }
 0x4b7   : > { %2279 = vrot.lane.b32.xlu1 %v2278_v52, %s2595_s24  ;;  %s1796_s24 = sshll.u32 %s2890_s18, 4  ;;  %s3092_s24 = int_to_ptr.vmem [resolvable:$true] %s1796_s24 }
 0x4b8   : > { %s2471_s9 = scalar_lea.vmem %s3092_s24, 256  ;;  %p2478_p7 = scmp.lt.s32.totalorder %s3092_s24, %s2476_s26 }
 0x4b9   : > { %p2472_p2 = scmp.ne.s32.totalorder %s3092_s24, %s2471_s9  ;;  %p2479_p11 = scmp.lt.s32.totalorder %s2477_s16, %s2471_s9 }
 0x4bb   : > { %p2473_p0 = pnand %p2472_p2, %p2815_p3  ;;  %p2480_p9 = por %p2479_p11, %p2478_p7 }
 0x4bd   : > { %p2474_p5 = pneg %p2473_p0 }
 0x4bf   : > { %p2481_p6 = pnand %p2480_p9, %p2474_p5 }
 0x519   : > { %v2270_v54 = vpop.permute.xlu1 %2269 }
 0x51a   : > { %v2272_v56 = vunpack.i.h.bf16 %v2270_v54  ;;  %v2271_v57 = vunpack.i.l.bf16 %v2270_v54 }
 0x51c   : > { %v1458_v62 = vsel %vm951_vm3, %v1063_v35, %v2272_v56  ;;  %v1457_v63 = vsel %vm951_vm3, %v1060_v33, %v2271_v57 }
 0x521   : > { %v2275_v55 = vpop.permute.xlu0 %2274 }
 0x522   : > { %v2277_v58 = vunpack.i.h.bf16 %v2275_v55  ;;  %v2276_v60 = vunpack.i.l.bf16 %v2275_v55 }
 0x524   : > { %v1460_v2 = vsel %vm999_vm4, %v1458_v62, %v2277_v58  ;;  %v1459_v4 = vsel %vm999_vm4, %v1457_v63, %v2276_v60 }
 0x529   : > { %v2280_v61 = vpop.permute.xlu1 %2279 }
 0x52a   : > { %v2282_v0 = vunpack.i.h.bf16 %v2280_v61  ;;  %v2281_v1 = vunpack.i.l.bf16 %v2280_v61 }
 0x52c   : > { %v1463_v5 = vsel %vm1461_vm5, %v1460_v2, %v2282_v0  ;;  %v1462_v6 = vsel %vm1461_vm5, %v1459_v4, %v2281_v1 }
 0x52d   : > { %v1464_v9 = vpack.c.bf16 %v1463_v5, %v1462_v6 }
 0x52f   : > { %2120 = vmatmul.mubr.msk.bf16.vlgmr.msra.gmra.mxu1 %vm766_vm2, %v1464_v9 }
 0x530   : > { %2139 = vmatprep.mubr.msk.bf16.mxu1 %vm2589_vm1, %v2588_v3  ;;  %2132 = vmatpush3.bf16.msra.mxu1 %v2293_v30 }
 0x531   : > { %2133 = vmatprep.subr.bf16.mxu1 %v2588_v3 }
 0x534   : > { %2134 = vmatpush3.bf16.msra.mxu1 %v2294_v48 }
 0x535   : > { %2135 = vmatprep.subr.bf16.mxu1 %v2588_v3 }
 0x538   : > { %2136 = vmatpush3.bf16.msra.mxu1 %v2295_v49 }
 0x539   : > { %2137 = vmatprep.subr.bf16.mxu1 %v2588_v3 }
 0x53c   : > { %2138 = vmatpush3.bf16.msra.mxu1 %v2296_v50 }
 0x5ef   : > { %v1525_v11 = vpop.f32.mrf.mxu1 }
 0x5f0   : > { %v1526_v12 = vadd.f32 %v1981_v10, %v1525_v11 }
 0x5f1   : > { %v2121_v13 = vpop.f32.mrf.mxu1 }
 0x5f2   : > { %v1532_v14 = vadd.f32 %v1526_v12, %v2914_v7 }
 0x5f3   : > { %v1528_v59 = vpop.f32.mrf.mxu1 }
 0x5f4   : > { %v1529_v15 = vadd.f32 %v1981_v10, %v1528_v59  ;;  %v1534_v16 = vsel %vm766_vm2, %v1532_v14, 0.0 }
 0x5f5   : > { %1535 = vadd.xlane.f32.xlu0 %v1534_v16  ;;  %v2122_v17 = vpop.f32.mrf.mxu1 }
 0x5f6   : > { %v1533_v18 = vadd.f32 %v1529_v15, %v2917_v8  ;;  %v2291_v8 = vld [vmem:[%s3227_s7 + $0x8] sm:$0xff]  }
 0x5f7   : > { %2124 = vmatpush3.bf16.msra.mxu0 %v2291_v8 }
 0x5f8   : > { %v1537_v19 = vsel %vm766_vm2, %v1533_v18, 0.0  ;;  %2125 = vmatprep.subr.bf16.mxu0 %v2588_v3  ;;  %v1991_v3 = vld [vmem:[%s3233_s20] ss:$0 sm:$0xff] }
 0x5f9   : > { %1538 = vadd.xlane.f32.xlu1 %v1537_v19 }
 0x5fb   : > { %2126 = vmatpush3.bf16.msra.mxu0 %v2292_v29 }
 0x67e   : > { %v1536_v20 = vpop.xlane.xlu0 %1535 }
 0x67f   : > { %v1541_v21 = vmul.f32 0.03125, %v1536_v20 }
 0x681   : > { %v1543_v22 = vsub.f32 %v1532_v14, %v1541_v21 }
 0x682   : > { %v1539_v23 = vpop.xlane.xlu1 %1538 }
 0x683   : > { %v1542_v24 = vmul.f32 0.03125, %v1539_v23  ;;  %v1545_v25 = vmul.f32 %v1543_v22, %v1543_v22 }
 0x685   : > { %v1544_v26 = vsub.f32 %v1533_v18, %v1542_v24  ;;  %v1547_v7 = vsel %vm766_vm2, %v1545_v25, 0.0 }
 0x686   : > { %1548 = vadd.xlane.f32.xlu0 %v1547_v7  ;;  %v1997_v7 = vld [vmem:[%s3234_s22] ss:$0 sm:$0xff] }
 0x687   : > { %v1546_v27 = vmul.f32 %v1544_v26, %v1544_v26 }
 0x689   : > { %v1550_v28 = vsel %vm766_vm2, %v1546_v27, 0.0 }
 0x68a   : > { %1551 = vadd.xlane.f32.xlu0 %v1550_v28  ;;  %v1998_v28 = vld [vmem:[%s3235_s3] ss:$0 sm:$0xff] }
 0x70f   : > { %v1549_v31 = vpop.xlane.xlu0 %1548 }
 0x710   : > { %v1553_v32 = vmul.f32 0.03125, %v1549_v31 }
 0x712   : > { %v1555_v33 = vadd.f32 1e-05, %v1553_v32 }
 0x713   : > { %v1552_v34 = vpop.xlane.xlu0 %1551 }
 0x714   : > { %2329 = vrsqrt.f32 %v1555_v33  ;;  %v1554_v35 = vmul.f32 0.03125, %v1552_v34 }
 0x716   : > { %v1556_v36 = vadd.f32 1e-05, %v1554_v35 }
 0x718   : > { %2331 = vrsqrt.f32 %v1556_v36 }
 0x721   : > { %v2330_v37 = vpop.eup %2329 }
 0x722   : > { %v1559_v38 = vmul.f32 %v2330_v37, %v1543_v22 }
 0x724   : > { %v1568_v42 = vmul.f32 %v1985_v39, %v1559_v38 }
 0x725   : > { %v2332_v40 = vpop.eup %2331 }
 0x726   : > { %v1560_v41 = vmul.f32 %v2332_v40, %v1544_v26  ;;  %v1577_v45 = vadd.f32 %v1986_v43, %v1568_v42 }
 0x728   : > { %v1569_v44 = vmul.f32 %v1985_v39, %v1560_v41 }
 0x72a   : > { %v1578_v46 = vadd.f32 %v1986_v43, %v1569_v44 }
 0x72c   : > { %v1579_v47 = vpack.c.bf16 %v1578_v46, %v1577_v45 }
 0x72e   : > { %2128 = vmatmul.mubr.msk.bf16.vlgmr.msra.gmra.mxu0 %vm766_vm2, %v1579_v47 }
 0x7ee   : > { %v1640_v52 = vpop.f32.mrf.mxu0 }
 0x7ef   : > { %v1641_v54 = vadd.f32 %v1987_v51, %v1640_v52 }
 0x7f0   : > { %v2129_v53 = vpop.f32.mrf.mxu0 }
 0x7f1   : > { %v1647_v58 = vmax.f32 %v1641_v54, 0.0 }
 0x7f2   : > { %v1643_v55 = vpop.f32.mrf.mxu0 }
 0x7f3   : > { %v1644_v56 = vadd.f32 %v1987_v51, %v1643_v55 }
 0x7f4   : > { %v2130_v57 = vpop.f32.mrf.mxu0 }
 0x7f5   : > { %v1648_v60 = vmax.f32 %v1644_v56, 0.0 }
 0x7f7   : > { %v1649_v61 = vpack.c.bf16 %v1648_v60, %v1647_v58 }
 0x7f9   : > { %2140 = vmatmul.mubr.msk.bf16.vlgmr.msra.gmra.mxu1 %vm1689_vm6, %v1649_v61 }
 0x8b9   : > { %v1727_v62 = vpop.f32.mrf.mxu1 }
 0x8ba   : > { %v1728_v63 = vadd.f32 %v1991_v3, %v1727_v62 }
 0x8bb   : > { %v2141_v0 = vpop.f32.mrf.mxu1 }
 0x8bc   : > { %v1734_v1 = vadd.f32 %v1728_v63, %v1577_v45 }
 0x8bd   : > { %v1730_v2 = vpop.f32.mrf.mxu1 }
 0x8be   : > { %v1731_v4 = vadd.f32 %v1991_v3, %v1730_v2  ;;  %v1736_v5 = vsel %vm766_vm2, %v1734_v1, 0.0 }
 0x8bf   : > { %1737 = vadd.xlane.f32.xlu1 %v1736_v5  ;;  %v2142_v6 = vpop.f32.mrf.mxu1 }
 0x8c0   : > { %v1735_v9 = vadd.f32 %v1731_v4, %v1578_v46 }
 0x8c2   : > { %v1739_v10 = vsel %vm766_vm2, %v1735_v9, 0.0 }
 0x8c3   : > { %1740 = vadd.xlane.f32.xlu0 %v1739_v10 }
 0x948   : > { %v1738_v11 = vpop.xlane.xlu1 %1737 }
 0x949   : > { %v1742_v12 = vmul.f32 0.03125, %v1738_v11 }
 0x94b   : > { %v1744_v13 = vsub.f32 %v1734_v1, %v1742_v12 }
 0x94c   : > { %v1741_v14 = vpop.xlane.xlu0 %1740 }
 0x94d   : > { %v1743_v59 = vmul.f32 0.03125, %v1741_v14  ;;  %v1746_v15 = vmul.f32 %v1744_v13, %v1744_v13 }
 0x94f   : > { %v1745_v16 = vsub.f32 %v1735_v9, %v1743_v59  ;;  %v1748_v17 = vsel %vm766_vm2, %v1746_v15, 0.0 }
 0x950   : > { %1749 = vadd.xlane.f32.xlu1 %v1748_v17 }
 0x951   : > { %v1747_v18 = vmul.f32 %v1745_v16, %v1745_v16 }
 0x953   : > { %v1751_v19 = vsel %vm766_vm2, %v1747_v18, 0.0 }
 0x954   : > { %1752 = vadd.xlane.f32.xlu0 %v1751_v19 }
 0x9d9   : > { %v1750_v20 = vpop.xlane.xlu1 %1749 }
 0x9da   : > { %v1754_v21 = vmul.f32 0.03125, %v1750_v20 }
 0x9dc   : > { %v1756_v22 = vadd.f32 1e-05, %v1754_v21 }
 0x9dd   : > { %v1753_v23 = vpop.xlane.xlu0 %1752 }
 0x9de   : > { %2333 = vrsqrt.f32 %v1756_v22  ;;  %v1755_v24 = vmul.f32 0.03125, %v1753_v23 }
 0x9e0   : > { %v1757_v25 = vadd.f32 1e-05, %v1755_v24 }
 0x9e2   : > { %2335 = vrsqrt.f32 %v1757_v25 }
 0x9eb   : > { %v2334_v26 = vpop.eup %2333 }
 0x9ec   : > { %v1760_v27 = vmul.f32 %v2334_v26, %v1744_v13 }
 0x9ee   : > { %v1769_v8 = vmul.f32 %v1997_v7, %v1760_v27 }
 0x9ef   : > { %v2336_v29 = vpop.eup %2335 }
 0x9f0   : > { %v1761_v30 = vmul.f32 %v2336_v29, %v1745_v16  ;;  %v1778_v31 = vadd.f32 %v1998_v28, %v1769_v8 }
 0x9f2   : > { %v1770_v32 = vmul.f32 %v1997_v7, %v1761_v30  ;;  %1780 = vst.msk [vmem:[%s2890_s18] sm:$0xff] %vm766_vm2, %v1778_v31 }
 0x9f4   : > { %v1779_v33 = vadd.f32 %v1998_v28, %v1770_v32 }
 0x9f6   : > { %1781 = vst.msk [vmem:[%s2890_s18 + $0x8] sm:$0xff] %vm766_vm2, %v1779_v33 }
 0x9f7   : > { %2484 = shalt.err (!%p2481_p6)
}
 0x9f8   : > { %s2485_s18 = scalar_lea.hbm %s3090_s29, 256  ;;  %s2489_s13 = scalar_lea.hbm %s3237_s12, 512 }
 0x9f9   : > { %p2486_p8 = scmp.ne.s32.totalorder %s3090_s29, %s2485_s18  ;;  %p2490_p13 = scmp.lt.s32.totalorder %s3090_s29, %s3237_s12 }
 0x9fa   : > { %p2491_p10 = scmp.lt.s32.totalorder %s2489_s13, %s2485_s18 }
 0x9fb   : > { %p2487_p4 = pnand %p2486_p8, %p2815_p3 }
 0x9fc   : > { %p2492_p1 = por %p2491_p10, %p2490_p13 }
 0x9fd   : > { %p2488_p12 = pneg %p2487_p4 }
 0x9ff   : > { %p2493_p2 = pnand %p2492_p1, %p2488_p12 }
 0xa01   : > { %2496 = shalt.err (!%p2493_p2)
}
 0xa02   : > { %s2597_s27 = smov 128  }
 0xa03   : > { %2159 = dma.vmem_to_hbm [thread:$0]  (%p2815_p3), %s3092_s24, 256, %s3090_s29, %s1783_s17, %s2597_s27, %s2597_s27, %s2593_s0  }
 0xa04 PF: > { %s3238_s3 = sld [smem:[#allocation20_spill]] }
 0xa05   : > { %s3239_s28 = sld [smem:[#allocation17_spill]] }
 0xa06   : > { %s3240_s25 = sld [smem:[#allocation21_spill]] }
 0xa0a   : > { %p2189_p0 = scmp.ge.s32.totalorder %s3238_s3, 2 }
 0xa0b   : > { %s1811_s21 = sand.u32 1, %s3239_s28  }
 0xa0c   : > { %p3241_p5 = scmp.ne.s32.totalorder %s3240_s25, 0  ;;  %s1812_s9 = scalar_lea.sflag [#allocation4], %s1811_s21 }
 0xa0e   : > { %p2179_p7 = pnand %p2189_p0, %p3241_p5 }
 0xa10   : > { %p2180_p11 = pneg %p2179_p7 }
 0xa12   : > { %2546 = dma.done.wait (%p2180_p11), %s1812_s9, 256  }
 0xa13   : > { %2548 = vsyncadd (%p2180_p11), %s1812_s9, 4294967040  ;;  %s39_s23 = sadd.s32 1, %s3238_s3   ;;  %s3242_s8 = sld [smem:[#allocation18_spill]] }
 0xa14   : > { %p36_p9 = scmp.ge.s32.totalorder %s39_s23, 6   ;;  %s3243_s20 = sld [smem:[#allocation25_spill]] }
 0xa15   : > { %s3244_s21 = sld [smem:[#allocation19_spill]]  ;;  %s3247_s0 = smov %s2555_s30 }
 0xa16   : > { %s3245_s22 = sld [smem:[#allocation22_spill]]  ;;  %s3249_s1 = smov %s2575_s2 }
 0xa17   : > { %s3246_s19 = sld [smem:[#allocation24_spill]] }
 0xa19   : > { %s3248_s30 = smov %s3242_s8  ;;  %38 = sbr.rel (!%p36_p9) target bundleno = 27 (0x1b), region = 173 }
 0xa1d   : > { %s3250_s2 = smov %s3246_s19 }
 0xa1e   :  { %1817 = vsyncpa [#allocation3], 1 }
 0xa1f   :  { %1819 = vsyncpa [#allocation3 + $0x1], 1 }
 0xa20   :  { %1820 = vsyncpa [#allocation6], 1 }
 0xa21   :  { %1822 = vsyncpa [#allocation6 + $0x1], 1 }
 0xa22   :  { %1823 = vsyncpa [#allocation9], 1 }
 0xa23   :  { %1824 = vsyncpa [#allocation4], 1 }
 0xa24   :  { %1826 = vsyncpa [#allocation4 + $0x1], 1 }

</bundles_post_ra>
